<compile_context>
chip_gen: v5e
topology: v5e:2x2
jax: 0.10.0
libtpu: 0.0.40
codegen_flags: <defaults>
</compile_context>

<pallas_src>
import functools

import jax
import jax.numpy as jnp
from jax.experimental import pallas as pl
from jax.experimental.pallas import tpu as pltpu

EPS = 1e-5
VMEM_LIMIT = 48 * 1024 * 1024   # keep well under v7x's 64 MiB physical VMEM
TM_TARGET = 512                 # target rows per tile (multiple of 8)


def _round_up(x, m):
    return ((x + m - 1) // m) * m


# --------------------------------------------------------------------------
# Pallas kernels
# --------------------------------------------------------------------------
def _mm_bn_kernel(x_ref, w_ref, s_ref, b_ref, o_ref, *, relu):
    """out = relu?( (x @ w) * scale + bias )  -- 1x1 conv + BN (+ ReLU)."""
    y = jnp.dot(x_ref[...], w_ref[...], preferred_element_type=jnp.float32)
    y = y * s_ref[...] + b_ref[...]
    if relu:
        y = jnp.maximum(y, 0.0)
    o_ref[...] = y.astype(o_ref.dtype)


def _conv3x3_kernel(xph_ref, w_ref, s_ref, b_ref, o_ref, *, stride, Ho, Wo):
    """3x3 grouped conv (block-diagonal dense weight) + BN + ReLU, one image.

    xph_ref: (s*s, Hq, Wq, C)  phase-split, padded input (bf16)
    w_ref  : (9, C, C)         block-diagonal per-tap weights (bf16)
    o_ref  : (1, Ho*Wo, C)
    """
    C = w_ref.shape[1]
    acc = None
    for dh in range(3):
        for dw in range(3):
            t = dh * 3 + dw
            rh, qh = dh % stride, dh // stride
            rw, qw = dw % stride, dw // stride
            win = xph_ref[rh * stride + rw, qh:qh + Ho, qw:qw + Wo, :]
            contrib = jnp.dot(win.reshape(Ho * Wo, C), w_ref[t],
                              preferred_element_type=jnp.float32)
            acc = contrib if acc is None else acc + contrib
    y = acc * s_ref[...] + b_ref[...]
    o_ref[0] = jnp.maximum(y, 0.0).astype(o_ref.dtype)


def _tail_kernel(h_ref, xs_ref, w3_ref, ws_ref, s3_ref, b3_ref, ss_ref, bs_ref,
                 o_ref):
    """out = relu( (h@w3)*s3+b3 + (xs@ws)*ss+bs )  -- conv3+bn3+shortcut+relu."""
    main = jnp.dot(h_ref[...], w3_ref[...], preferred_element_type=jnp.float32)
    main = main * s3_ref[...] + b3_ref[...]
    sc = jnp.dot(xs_ref[...], ws_ref[...], preferred_element_type=jnp.float32)
    sc = sc * ss_ref[...] + bs_ref[...]
    o_ref[...] = jnp.maximum(main + sc, 0.0).astype(o_ref.dtype)


# --------------------------------------------------------------------------
# Pallas wrappers
# --------------------------------------------------------------------------
def mm_bn(x, w, scale, bias, *, relu, out_dtype):
    M, K = x.shape
    N = w.shape[1]
    TM = min(TM_TARGET, _round_up(M, 8))
    Mp = _round_up(M, TM)
    if Mp != M:
        x = jnp.pad(x, ((0, Mp - M), (0, 0)))
    out = pl.pallas_call(
        functools.partial(_mm_bn_kernel, relu=relu),
        out_shape=jax.ShapeDtypeStruct((Mp, N), out_dtype),
        grid=(Mp // TM,),
        in_specs=[
            pl.BlockSpec((TM, K), lambda i: (i, 0)),
            pl.BlockSpec((K, N), lambda i: (0, 0)),   # resident weights
            pl.BlockSpec((1, N), lambda i: (0, 0)),
            pl.BlockSpec((1, N), lambda i: (0, 0)),
        ],
        out_specs=pl.BlockSpec((TM, N), lambda i: (i, 0)),
        compiler_params=pltpu.CompilerParams(
            dimension_semantics=("parallel",),
            vmem_limit_bytes=VMEM_LIMIT),
    )(x, w, scale, bias)
    return out[:M] if Mp != M else out


def conv3x3_grouped(h1_nhwc, w2d, scale, bias, *, stride):
    """3x3 conv, pad=1, given stride; groups folded into block-diagonal w2d."""
    N, H, W, C = h1_nhwc.shape
    s = stride
    Ho = (H - 1) // s + 1
    Wo = (W - 1) // s + 1
    # pad=1 spatially, then pad up so H/W are divisible by the stride
    xp = jnp.pad(h1_nhwc, ((0, 0), (1, 1), (1, 1), (0, 0)))
    Hp, Wp = H + 2, W + 2
    Hp2, Wp2 = _round_up(Hp, s), _round_up(Wp, s)
    if (Hp2, Wp2) != (Hp, Wp):
        xp = jnp.pad(xp, ((0, 0), (0, Hp2 - Hp), (0, Wp2 - Wp), (0, 0)))
    Hq, Wq = Hp2 // s, Wp2 // s
    # phase split: xph[n, rh, rw, a, b, c] = xp[n, a*s+rh, b*s+rw, c]
    xph = xp.reshape(N, Hq, s, Wq, s, C).transpose(0, 2, 4, 1, 3, 5)
    xph = xph.reshape(N * s * s, Hq, Wq, C)

    out = pl.pallas_call(
        functools.partial(_conv3x3_kernel, stride=s, Ho=Ho, Wo=Wo),
        out_shape=jax.ShapeDtypeStruct((N, Ho * Wo, C), jnp.bfloat16),
        grid=(N,),
        in_specs=[
            pl.BlockSpec((s * s, Hq, Wq, C), lambda n: (n, 0, 0, 0)),
            pl.BlockSpec((9, C, C), lambda n: (0, 0, 0)),   # resident weights
            pl.BlockSpec((1, C), lambda n: (0, 0)),
            pl.BlockSpec((1, C), lambda n: (0, 0)),
        ],
        out_specs=pl.BlockSpec((1, Ho * Wo, C), lambda n: (n, 0, 0)),
        compiler_params=pltpu.CompilerParams(
            dimension_semantics=("parallel",),
            vmem_limit_bytes=VMEM_LIMIT),
    )(xph, w2d, scale, bias)
    return out.reshape(N * Ho * Wo, C), Ho, Wo


def tail_fused(h2, xs, w3, s3, b3, ws, ss, bs):
    M, Cw = h2.shape
    Cin = xs.shape[1]
    Cout = w3.shape[1]
    TM = min(TM_TARGET, _round_up(M, 8))
    Mp = _round_up(M, TM)
    if Mp != M:
        h2 = jnp.pad(h2, ((0, Mp - M), (0, 0)))
        xs = jnp.pad(xs, ((0, Mp - M), (0, 0)))
    out = pl.pallas_call(
        _tail_kernel,
        out_shape=jax.ShapeDtypeStruct((Mp, Cout), jnp.float32),
        grid=(Mp // TM,),
        in_specs=[
            pl.BlockSpec((TM, Cw), lambda i: (i, 0)),
            pl.BlockSpec((TM, Cin), lambda i: (i, 0)),
            pl.BlockSpec((Cw, Cout), lambda i: (0, 0)),
            pl.BlockSpec((Cin, Cout), lambda i: (0, 0)),
            pl.BlockSpec((1, Cout), lambda i: (0, 0)),
            pl.BlockSpec((1, Cout), lambda i: (0, 0)),
            pl.BlockSpec((1, Cout), lambda i: (0, 0)),
            pl.BlockSpec((1, Cout), lambda i: (0, 0)),
        ],
        out_specs=pl.BlockSpec((TM, Cout), lambda i: (i, 0)),
        compiler_params=pltpu.CompilerParams(
            dimension_semantics=("parallel",),
            vmem_limit_bytes=VMEM_LIMIT),
    )(h2, xs, w3, ws, s3, b3, ss, bs)
    return out[:M] if Mp != M else out


# --------------------------------------------------------------------------
# Bottleneck forward (Pallas)
# --------------------------------------------------------------------------
def bottleneck_forward(x_nchw, p, *, stride, cardinality):
    del cardinality  # groups already folded into the block-diagonal weight
    x = jnp.transpose(x_nchw, (0, 2, 3, 1)).astype(jnp.bfloat16)   # NHWC bf16
    N, H, W, Cin = x.shape
    Cw = p["w1"].shape[1]
    Cout = p["w3"].shape[1]

    # block1: 1x1 conv + BN + ReLU (M-tiled matmul, bf16 in / f32 acc / bf16 out)
    h1 = mm_bn(x.reshape(N * H * W, Cin), p["w1"], p["s1"], p["b1"],
               relu=True, out_dtype=jnp.bfloat16)
    h1 = h1.reshape(N, H, W, Cw)

    # block2: 3x3 grouped conv (stride, pad=1) + BN + ReLU (no im2col blowup)
    h2, Ho, Wo = conv3x3_grouped(h1, p["w2d"], p["s2"], p["b2"], stride=stride)

    # conv3 + bn3 + shortcut(1x1 stride conv + BN) + add + ReLU, fused
    xs = x[:, ::stride, ::stride, :].reshape(N * Ho * Wo, Cin)
    out = tail_fused(h2, xs, p["w3"], p["s3"], p["b3"], p["ws"], p["ss"], p["bs"])
    out = out.reshape(N, Ho, Wo, Cout)
    return jnp.transpose(out, (0, 3, 1, 2))                        # back to NCHW


# --------------------------------------------------------------------------
# Pure-JAX reference (lax.conv) for verification.
# Inputs/intermediates are rounded to bf16 to mirror the kernel's bf16-in /
# f32-accumulate data path, so the comparison is tight.
# --------------------------------------------------------------------------
def reference_forward(x_nchw, p, *, stride, cardinality):
    q = lambda t: t.astype(jnp.bfloat16).astype(jnp.float32)
    dn = ("NHWC", "HWIO", "NHWC")
    x = q(jnp.transpose(x_nchw, (0, 2, 3, 1)).astype(jnp.float32))

    def conv(h, w_oihw, s, pad, groups=1):
        w = q(jnp.transpose(w_oihw, (2, 3, 1, 0)))      # OIHW -> HWIO
        return jax.lax.conv_general_dilated(
            h, w, (s, s), pad, dimension_numbers=dn,
            feature_group_count=groups,
            precision=jax.lax.Precision.HIGHEST)

    def bn(h, gamma, beta):
        return h * (gamma / jnp.sqrt(1.0 + EPS)) + beta

    h = q(jax.nn.relu(bn(conv(x, p["w1_oihw"], 1, "VALID"), p["g1"], p["be1"])))
    h = q(jax.nn.relu(bn(conv(h, p["w2_oihw"], stride, ((1, 1), (1, 1)),
                              groups=cardinality), p["g2"], p["be2"])))
    h = bn(conv(h, p["w3_oihw"], 1, "VALID"), p["g3"], p["be3"])
    s = bn(conv(x, p["ws_oihw"], stride, "VALID"), p["gs"], p["bes"])
    return jnp.transpose(jax.nn.relu(h + s), (0, 3, 1, 2))


# --------------------------------------------------------------------------
# Deterministic parameter construction
# --------------------------------------------------------------------------
def make_params(key, in_planes, out_planes, cardinality, d_width):
    conv_width = cardinality * d_width * (out_planes // 256)
    G = cardinality
    Cg = conv_width // G
    Ng = conv_width // G
    ks = jax.random.split(key, 12)

    w1_oihw = 0.1 * jax.random.normal(ks[0], (conv_width, in_planes, 1, 1), jnp.float32)
    w2_oihw = 0.1 * jax.random.normal(ks[1], (conv_width, Cg, 3, 3), jnp.float32)
    w3_oihw = 0.1 * jax.random.normal(ks[2], (out_planes, conv_width, 1, 1), jnp.float32)
    ws_oihw = 0.1 * jax.random.normal(ks[3], (out_planes, in_planes, 1, 1), jnp.float32)

    g1 = 1.0 + 0.1 * jax.random.normal(ks[4], (conv_width,), jnp.float32)
    be1 = 0.1 * jax.random.normal(ks[5], (conv_width,), jnp.float32)
    g2 = 1.0 + 0.1 * jax.random.normal(ks[6], (conv_width,), jnp.float32)
    be2 = 0.1 * jax.random.normal(ks[7], (conv_width,), jnp.float32)
    g3 = 1.0 + 0.1 * jax.random.normal(ks[8], (out_planes,), jnp.float32)
    be3 = 0.1 * jax.random.normal(ks[9], (out_planes,), jnp.float32)
    gs = 1.0 + 0.1 * jax.random.normal(ks[10], (out_planes,), jnp.float32)
    bes = 0.1 * jax.random.normal(ks[11], (out_planes,), jnp.float32)

    inv = 1.0 / jnp.sqrt(1.0 + EPS)   # BN eval mode: running_mean=0, running_var=1

    # block-diagonal dense weight for the grouped 3x3 conv: (9, Cw, Cw)
    wg = w2_oihw.reshape(G, Ng, Cg, 3, 3)
    blocks = jnp.transpose(wg, (3, 4, 0, 2, 1))                    # (3,3,G,Cg,Ng)
    eye = jnp.eye(G, dtype=jnp.float32)
    w2d = jnp.einsum("uvgio,gh->uvgiho", blocks, eye).reshape(9, conv_width, conv_width)

    p = {
        # torch-convention weights (for the reference conv path)
        "w1_oihw": w1_oihw, "w2_oihw": w2_oihw, "w3_oihw": w3_oihw, "ws_oihw": ws_oihw,
        "g1": g1, "be1": be1, "g2": g2, "be2": be2,
        "g3": g3, "be3": be3, "gs": gs, "bes": bes,
        # kernel layouts (bf16 weights, f32 folded BN scale/bias)
        "w1": jnp.transpose(w1_oihw[:, :, 0, 0]).astype(jnp.bfloat16),     # (Cin, Cw)
        "s1": (g1 * inv).reshape(1, conv_width),
        "b1": be1.reshape(1, conv_width),
        "w2d": w2d.astype(jnp.bfloat16),                                   # (9, Cw, Cw)
        "s2": (g2 * inv).reshape(1, conv_width),
        "b2": be2.reshape(1, conv_width),
        "w3": jnp.transpose(w3_oihw[:, :, 0, 0]).astype(jnp.bfloat16),     # (Cw, Cout)
        "s3": (g3 * inv).reshape(1, out_planes),
        "b3": be3.reshape(1, out_planes),
        "ws": jnp.transpose(ws_oihw[:, :, 0, 0]).astype(jnp.bfloat16),     # (Cin, Cout)
        "ss": (gs * inv).reshape(1, out_planes),
        "bs": bes.reshape(1, out_planes),
    }
    return p


# --------------------------------------------------------------------------
if __name__ == "__main__":
    # Small ResNeXt bottleneck config (out_planes must be >= 256 so conv_width > 0)
    batch, H, W = 2, 8, 8
    in_planes, out_planes = 64, 256
    cardinality, d_width, stride = 8, 4, 2

    key = jax.random.PRNGKey(0)
    kx, kp = jax.random.split(key)
    x = jax.random.normal(kx, (batch, in_planes, H, W), jnp.float32)
    params = make_params(kp, in_planes, out_planes, cardinality, d_width)

    fwd = jax.jit(functools.partial(bottleneck_forward,
                                    stride=stride, cardinality=cardinality))
    out = jax.block_until_ready(fwd(x, params))

    ref = jax.block_until_ready(
        reference_forward(x, params, stride=stride, cardinality=cardinality))

    assert out.shape == (batch, out_planes, H // stride, W // stride), out.shape
    err = float(jnp.max(jnp.abs(out - ref)))
    assert jnp.allclose(out, ref, atol=2e-2, rtol=2e-2), err

    print("KERNEL_OK")
</pallas_src>

<mosaic_0001>
module attributes {stable_mosaic.version = 11 : i64} {
  func.func @_mm_bn_kernel(%arg0: i32, %arg1: memref<128x64xbf16, #tpu.memory_space<vmem>>, %arg2: memref<64x32xbf16, #tpu.memory_space<vmem>>, %arg3: memref<1x32xf32, #tpu.memory_space<vmem>>, %arg4: memref<1x32xf32, #tpu.memory_space<vmem>>, %arg5: memref<128x32xbf16, #tpu.memory_space<vmem>>) attributes {dimension_semantics = [#tpu.dimension_semantics<parallel>], iteration_bounds = array<i64: 1>, scalar_prefetch = 0 : i64, scratch_operands = 0 : i64, tpu.core_type = #tpu.core_type<tc>, window_params = [{transform_indices = @transform_0, window_bounds = array<i64: 128, 64>}, {pipeline_mode = #tpu.pipeline_mode<synchronous>, transform_indices = @transform_1, window_bounds = array<i64: 64, 32>}, {pipeline_mode = #tpu.pipeline_mode<synchronous>, transform_indices = @transform_2, window_bounds = array<i64: 1, 32>}, {pipeline_mode = #tpu.pipeline_mode<synchronous>, transform_indices = @transform_3, window_bounds = array<i64: 1, 32>}, {transform_indices = @transform_4, window_bounds = array<i64: 128, 32>}]} {
    %c0 = arith.constant 0 : index
    %c0_0 = arith.constant 0 : index
    %0 = vector.load %arg1[%c0, %c0_0] : memref<128x64xbf16, #tpu.memory_space<vmem>>, vector<128x64xbf16>
    %c0_1 = arith.constant 0 : index
    %c0_2 = arith.constant 0 : index
    %1 = vector.load %arg2[%c0_1, %c0_2] : memref<64x32xbf16, #tpu.memory_space<vmem>>, vector<64x32xbf16>
    %cst = arith.constant dense<0.000000e+00> : vector<128x32xf32>
    %2 = tpu.matmul %0, %1, %cst {dimension_numbers = #tpu.dot_dimension_numbers<[1], [0], [0], [1], [0, 0, 1, 1], [], []>} : vector<128x64xbf16>, vector<64x32xbf16>, vector<128x32xf32> -> vector<128x32xf32>
    %c0_3 = arith.constant 0 : index
    %c0_4 = arith.constant 0 : index
    %3 = vector.load %arg3[%c0_3, %c0_4] : memref<1x32xf32, #tpu.memory_space<vmem>>, vector<1x32xf32>
    %4 = vector.broadcast %3 : vector<1x32xf32> to vector<128x32xf32>
    %5 = arith.mulf %2, %4 : vector<128x32xf32>
    %c0_5 = arith.constant 0 : index
    %c0_6 = arith.constant 0 : index
    %6 = vector.load %arg4[%c0_5, %c0_6] : memref<1x32xf32, #tpu.memory_space<vmem>>, vector<1x32xf32>
    %7 = vector.broadcast %6 : vector<1x32xf32> to vector<128x32xf32>
    %8 = arith.addf %5, %7 : vector<128x32xf32>
    %cst_7 = arith.constant 0.000000e+00 : f32
    %9 = vector.broadcast %cst_7 : f32 to vector<128x32xf32>
    %10 = arith.maximumf %8, %9 : vector<128x32xf32>
    %11 = arith.truncf %10 : vector<128x32xf32> to vector<128x32xbf16>
    %c0_8 = arith.constant 0 : index
    %c0_9 = arith.constant 0 : index
    %12 = vector.load %arg5[%c0_8, %c0_9] : memref<128x32xbf16, #tpu.memory_space<vmem>>, vector<128x32xbf16>
    tpu.vector_store %arg5[%c0_8, %c0_9], %11 {strides = array<i32>} : memref<128x32xbf16, #tpu.memory_space<vmem>>, vector<128x32xbf16>,
    return
  }
  func.func @transform_0(%arg0: i32) -> (i32, i32) {
    %c0_i32 = arith.constant 0 : i32
    %c0_i32_0 = arith.constant 0 : i32
    return %arg0, %c0_i32 : i32, i32
  }
  func.func @transform_1(%arg0: i32) -> (i32, i32) {
    %c0_i32 = arith.constant 0 : i32
    %c0_i32_0 = arith.constant 0 : i32
    %c0_i32_1 = arith.constant 0 : i32
    return %c0_i32, %c0_i32_0 : i32, i32
  }
  func.func @transform_2(%arg0: i32) -> (i32, i32) {
    %c0_i32 = arith.constant 0 : i32
    %c0_i32_0 = arith.constant 0 : i32
    %c0_i32_1 = arith.constant 0 : i32
    return %c0_i32, %c0_i32_0 : i32, i32
  }
  func.func @transform_3(%arg0: i32) -> (i32, i32) {
    %c0_i32 = arith.constant 0 : i32
    %c0_i32_0 = arith.constant 0 : i32
    %c0_i32_1 = arith.constant 0 : i32
    return %c0_i32, %c0_i32_0 : i32, i32
  }
  func.func @transform_4(%arg0: i32) -> (i32, i32) {
    %c0_i32 = arith.constant 0 : i32
    %c0_i32_0 = arith.constant 0 : i32
    return %arg0, %c0_i32 : i32, i32
  }
}

module attributes {stable_mosaic.version = 11 : i64} {
  func.func @_conv3x3_kernel(%arg0: i32, %arg1: memref<4x5x5x32xbf16, #tpu.memory_space<vmem>>, %arg2: memref<9x32x32xbf16, #tpu.memory_space<vmem>>, %arg3: memref<1x32xf32, #tpu.memory_space<vmem>>, %arg4: memref<1x32xf32, #tpu.memory_space<vmem>>, %arg5: memref<1x16x32xbf16, #tpu.memory_space<vmem>>) attributes {dimension_semantics = [#tpu.dimension_semantics<parallel>], iteration_bounds = array<i64: 2>, scalar_prefetch = 0 : i64, scratch_operands = 0 : i64, tpu.core_type = #tpu.core_type<tc>, window_params = [{transform_indices = @transform_0, window_bounds = array<i64: 4, 5, 5, 32>}, {pipeline_mode = #tpu.pipeline_mode<synchronous>, transform_indices = @transform_1, window_bounds = array<i64: 9, 32, 32>}, {pipeline_mode = #tpu.pipeline_mode<synchronous>, transform_indices = @transform_2, window_bounds = array<i64: 1, 32>}, {pipeline_mode = #tpu.pipeline_mode<synchronous>, transform_indices = @transform_3, window_bounds = array<i64: 1, 32>}, {transform_indices = @transform_4, window_bounds = array<i64: 1, 16, 32>}]} {
    %c0 = arith.constant 0 : index
    %c0_0 = arith.constant 0 : index
    %c0_1 = arith.constant 0 : index
    %c0_2 = arith.constant 0 : index
    %0 = vector.load %arg1[%c0, %c0_0, %c0_1, %c0_2] : memref<4x5x5x32xbf16, #tpu.memory_space<vmem>>, vector<1x4x4x32xbf16>
    %1 = vector.shape_cast %0 : vector<1x4x4x32xbf16> to vector<4x4x32xbf16>
    %2 = vector.shape_cast %1 : vector<4x4x32xbf16> to vector<16x32xbf16>
    %c0_3 = arith.constant 0 : index
    %c0_4 = arith.constant 0 : index
    %c0_5 = arith.constant 0 : index
    %3 = vector.load %arg2[%c0_3, %c0_4, %c0_5] : memref<9x32x32xbf16, #tpu.memory_space<vmem>>, vector<1x32x32xbf16>
    %4 = vector.shape_cast %3 : vector<1x32x32xbf16> to vector<32x32xbf16>
    %cst = arith.constant dense<0.000000e+00> : vector<16x32xf32>
    %5 = tpu.matmul %2, %4, %cst {dimension_numbers = #tpu.dot_dimension_numbers<[1], [0], [0], [1], [0, 0, 1, 1], [], []>} : vector<16x32xbf16>, vector<32x32xbf16>, vector<16x32xf32> -> vector<16x32xf32>
    %c1 = arith.constant 1 : index
    %c0_6 = arith.constant 0 : index
    %c0_7 = arith.constant 0 : index
    %c0_8 = arith.constant 0 : index
    %6 = vector.load %arg1[%c1, %c0_6, %c0_7, %c0_8] : memref<4x5x5x32xbf16, #tpu.memory_space<vmem>>, vector<1x4x4x32xbf16>
    %7 = vector.shape_cast %6 : vector<1x4x4x32xbf16> to vector<4x4x32xbf16>
    %8 = vector.shape_cast %7 : vector<4x4x32xbf16> to vector<16x32xbf16>
    %c1_9 = arith.constant 1 : index
    %c0_10 = arith.constant 0 : index
    %c0_11 = arith.constant 0 : index
    %9 = vector.load %arg2[%c1_9, %c0_10, %c0_11] : memref<9x32x32xbf16, #tpu.memory_space<vmem>>, vector<1x32x32xbf16>
    %10 = vector.shape_cast %9 : vector<1x32x32xbf16> to vector<32x32xbf16>
    %cst_12 = arith.constant dense<0.000000e+00> : vector<16x32xf32>
    %11 = tpu.matmul %8, %10, %cst_12 {dimension_numbers = #tpu.dot_dimension_numbers<[1], [0], [0], [1], [0, 0, 1, 1], [], []>} : vector<16x32xbf16>, vector<32x32xbf16>, vector<16x32xf32> -> vector<16x32xf32>
    %12 = arith.addf %5, %11 : vector<16x32xf32>
    %c0_13 = arith.constant 0 : index
    %c0_14 = arith.constant 0 : index
    %c1_15 = arith.constant 1 : index
    %c0_16 = arith.constant 0 : index
    %13 = vector.load %arg1[%c0_13, %c0_14, %c1_15, %c0_16] : memref<4x5x5x32xbf16, #tpu.memory_space<vmem>>, vector<1x4x4x32xbf16>
    %14 = vector.shape_cast %13 : vector<1x4x4x32xbf16> to vector<4x4x32xbf16>
    %15 = vector.shape_cast %14 : vector<4x4x32xbf16> to vector<16x32xbf16>
    %c2 = arith.constant 2 : index
    %c0_17 = arith.constant 0 : index
    %c0_18 = arith.constant 0 : index
    %16 = vector.load %arg2[%c2, %c0_17, %c0_18] : memref<9x32x32xbf16, #tpu.memory_space<vmem>>, vector<1x32x32xbf16>
    %17 = vector.shape_cast %16 : vector<1x32x32xbf16> to vector<32x32xbf16>
    %cst_19 = arith.constant dense<0.000000e+00> : vector<16x32xf32>
    %18 = tpu.matmul %15, %17, %cst_19 {dimension_numbers = #tpu.dot_dimension_numbers<[1], [0], [0], [1], [0, 0, 1, 1], [], []>} : vector<16x32xbf16>, vector<32x32xbf16>, vector<16x32xf32> -> vector<16x32xf32>
    %19 = arith.addf %12, %18 : vector<16x32xf32>
    %c2_20 = arith.constant 2 : index
    %c0_21 = arith.constant 0 : index
    %c0_22 = arith.constant 0 : index
    %c0_23 = arith.constant 0 : index
    %20 = vector.load %arg1[%c2_20, %c0_21, %c0_22, %c0_23] : memref<4x5x5x32xbf16, #tpu.memory_space<vmem>>, vector<1x4x4x32xbf16>
    %21 = vector.shape_cast %20 : vector<1x4x4x32xbf16> to vector<4x4x32xbf16>
    %22 = vector.shape_cast %21 : vector<4x4x32xbf16> to vector<16x32xbf16>
    %c3 = arith.constant 3 : index
    %c0_24 = arith.constant 0 : index
    %c0_25 = arith.constant 0 : index
    %23 = vector.load %arg2[%c3, %c0_24, %c0_25] : memref<9x32x32xbf16, #tpu.memory_space<vmem>>, vector<1x32x32xbf16>
    %24 = vector.shape_cast %23 : vector<1x32x32xbf16> to vector<32x32xbf16>
    %cst_26 = arith.constant dense<0.000000e+00> : vector<16x32xf32>
    %25 = tpu.matmul %22, %24, %cst_26 {dimension_numbers = #tpu.dot_dimension_numbers<[1], [0], [0], [1], [0, 0, 1, 1], [], []>} : vector<16x32xbf16>, vector<32x32xbf16>, vector<16x32xf32> -> vector<16x32xf32>
    %26 = arith.addf %19, %25 : vector<16x32xf32>
    %c3_27 = arith.constant 3 : index
    %c0_28 = arith.constant 0 : index
    %c0_29 = arith.constant 0 : index
    %c0_30 = arith.constant 0 : index
    %27 = vector.load %arg1[%c3_27, %c0_28, %c0_29, %c0_30] : memref<4x5x5x32xbf16, #tpu.memory_space<vmem>>, vector<1x4x4x32xbf16>
    %28 = vector.shape_cast %27 : vector<1x4x4x32xbf16> to vector<4x4x32xbf16>
    %29 = vector.shape_cast %28 : vector<4x4x32xbf16> to vector<16x32xbf16>
    %c4 = arith.constant 4 : index
    %c0_31 = arith.constant 0 : index
    %c0_32 = arith.constant 0 : index
    %30 = vector.load %arg2[%c4, %c0_31, %c0_32] : memref<9x32x32xbf16, #tpu.memory_space<vmem>>, vector<1x32x32xbf16>
    %31 = vector.shape_cast %30 : vector<1x32x32xbf16> to vector<32x32xbf16>
    %cst_33 = arith.constant dense<0.000000e+00> : vector<16x32xf32>
    %32 = tpu.matmul %29, %31, %cst_33 {dimension_numbers = #tpu.dot_dimension_numbers<[1], [0], [0], [1], [0, 0, 1, 1], [], []>} : vector<16x32xbf16>, vector<32x32xbf16>, vector<16x32xf32> -> vector<16x32xf32>
    %33 = arith.addf %26, %32 : vector<16x32xf32>
    %c2_34 = arith.constant 2 : index
    %c0_35 = arith.constant 0 : index
    %c1_36 = arith.constant 1 : index
    %c0_37 = arith.constant 0 : index
    %34 = vector.load %arg1[%c2_34, %c0_35, %c1_36, %c0_37] : memref<4x5x5x32xbf16, #tpu.memory_space<vmem>>, vector<1x4x4x32xbf16>
    %35 = vector.shape_cast %34 : vector<1x4x4x32xbf16> to vector<4x4x32xbf16>
    %36 = vector.shape_cast %35 : vector<4x4x32xbf16> to vector<16x32xbf16>
    %c5 = arith.constant 5 : index
    %c0_38 = arith.constant 0 : index
    %c0_39 = arith.constant 0 : index
    %37 = vector.load %arg2[%c5, %c0_38, %c0_39] : memref<9x32x32xbf16, #tpu.memory_space<vmem>>, vector<1x32x32xbf16>
    %38 = vector.shape_cast %37 : vector<1x32x32xbf16> to vector<32x32xbf16>
    %cst_40 = arith.constant dense<0.000000e+00> : vector<16x32xf32>
    %39 = tpu.matmul %36, %38, %cst_40 {dimension_numbers = #tpu.dot_dimension_numbers<[1], [0], [0], [1], [0, 0, 1, 1], [], []>} : vector<16x32xbf16>, vector<32x32xbf16>, vector<16x32xf32> -> vector<16x32xf32>
    %40 = arith.addf %33, %39 : vector<16x32xf32>
    %c0_41 = arith.constant 0 : index
    %c1_42 = arith.constant 1 : index
    %c0_43 = arith.constant 0 : index
    %c0_44 = arith.constant 0 : index
    %41 = vector.load %arg1[%c0_41, %c1_42, %c0_43, %c0_44] : memref<4x5x5x32xbf16, #tpu.memory_space<vmem>>, vector<1x4x4x32xbf16>
    %42 = vector.shape_cast %41 : vector<1x4x4x32xbf16> to vector<4x4x32xbf16>
    %43 = vector.shape_cast %42 : vector<4x4x32xbf16> to vector<16x32xbf16>
    %c6 = arith.constant 6 : index
    %c0_45 = arith.constant 0 : index
    %c0_46 = arith.constant 0 : index
    %44 = vector.load %arg2[%c6, %c0_45, %c0_46] : memref<9x32x32xbf16, #tpu.memory_space<vmem>>, vector<1x32x32xbf16>
    %45 = vector.shape_cast %44 : vector<1x32x32xbf16> to vector<32x32xbf16>
    %cst_47 = arith.constant dense<0.000000e+00> : vector<16x32xf32>
    %46 = tpu.matmul %43, %45, %cst_47 {dimension_numbers = #tpu.dot_dimension_numbers<[1], [0], [0], [1], [0, 0, 1, 1], [], []>} : vector<16x32xbf16>, vector<32x32xbf16>, vector<16x32xf32> -> vector<16x32xf32>
    %47 = arith.addf %40, %46 : vector<16x32xf32>
    %c1_48 = arith.constant 1 : index
    %c1_49 = arith.constant 1 : index
    %c0_50 = arith.constant 0 : index
    %c0_51 = arith.constant 0 : index
    %48 = vector.load %arg1[%c1_48, %c1_49, %c0_50, %c0_51] : memref<4x5x5x32xbf16, #tpu.memory_space<vmem>>, vector<1x4x4x32xbf16>
    %49 = vector.shape_cast %48 : vector<1x4x4x32xbf16> to vector<4x4x32xbf16>
    %50 = vector.shape_cast %49 : vector<4x4x32xbf16> to vector<16x32xbf16>
    %c7 = arith.constant 7 : index
    %c0_52 = arith.constant 0 : index
    %c0_53 = arith.constant 0 : index
    %51 = vector.load %arg2[%c7, %c0_52, %c0_53] : memref<9x32x32xbf16, #tpu.memory_space<vmem>>, vector<1x32x32xbf16>
    %52 = vector.shape_cast %51 : vector<1x32x32xbf16> to vector<32x32xbf16>
    %cst_54 = arith.constant dense<0.000000e+00> : vector<16x32xf32>
    %53 = tpu.matmul %50, %52, %cst_54 {dimension_numbers = #tpu.dot_dimension_numbers<[1], [0], [0], [1], [0, 0, 1, 1], [], []>} : vector<16x32xbf16>, vector<32x32xbf16>, vector<16x32xf32> -> vector<16x32xf32>
    %54 = arith.addf %47, %53 : vector<16x32xf32>
    %c0_55 = arith.constant 0 : index
    %c1_56 = arith.constant 1 : index
    %c1_57 = arith.constant 1 : index
    %c0_58 = arith.constant 0 : index
    %55 = vector.load %arg1[%c0_55, %c1_56, %c1_57, %c0_58] : memref<4x5x5x32xbf16, #tpu.memory_space<vmem>>, vector<1x4x4x32xbf16>
    %56 = vector.shape_cast %55 : vector<1x4x4x32xbf16> to vector<4x4x32xbf16>
    %57 = vector.shape_cast %56 : vector<4x4x32xbf16> to vector<16x32xbf16>
    %c8 = arith.constant 8 : index
    %c0_59 = arith.constant 0 : index
    %c0_60 = arith.constant 0 : index
    %58 = vector.load %arg2[%c8, %c0_59, %c0_60] : memref<9x32x32xbf16, #tpu.memory_space<vmem>>, vector<1x32x32xbf16>
    %59 = vector.shape_cast %58 : vector<1x32x32xbf16> to vector<32x32xbf16>
    %cst_61 = arith.constant dense<0.000000e+00> : vector<16x32xf32>
    %60 = tpu.matmul %57, %59, %cst_61 {dimension_numbers = #tpu.dot_dimension_numbers<[1], [0], [0], [1], [0, 0, 1, 1], [], []>} : vector<16x32xbf16>, vector<32x32xbf16>, vector<16x32xf32> -> vector<16x32xf32>
    %61 = arith.addf %54, %60 : vector<16x32xf32>
    %c0_62 = arith.constant 0 : index
    %c0_63 = arith.constant 0 : index
    %62 = vector.load %arg3[%c0_62, %c0_63] : memref<1x32xf32, #tpu.memory_space<vmem>>, vector<1x32xf32>
    %63 = vector.broadcast %62 : vector<1x32xf32> to vector<16x32xf32>
    %64 = arith.mulf %61, %63 : vector<16x32xf32>
    %c0_64 = arith.constant 0 : index
    %c0_65 = arith.constant 0 : index
    %65 = vector.load %arg4[%c0_64, %c0_65] : memref<1x32xf32, #tpu.memory_space<vmem>>, vector<1x32xf32>
    %66 = vector.broadcast %65 : vector<1x32xf32> to vector<16x32xf32>
    %67 = arith.addf %64, %66 : vector<16x32xf32>
    %cst_66 = arith.constant 0.000000e+00 : f32
    %68 = vector.broadcast %cst_66 : f32 to vector<16x32xf32>
    %69 = arith.maximumf %67, %68 : vector<16x32xf32>
    %70 = arith.truncf %69 : vector<16x32xf32> to vector<16x32xbf16>
    %c0_67 = arith.constant 0 : index
    %c0_68 = arith.constant 0 : index
    %c0_69 = arith.constant 0 : index
    %71 = vector.load %arg5[%c0_67, %c0_68, %c0_69] : memref<1x16x32xbf16, #tpu.memory_space<vmem>>, vector<1x16x32xbf16>
    %72 = vector.shape_cast %71 : vector<1x16x32xbf16> to vector<16x32xbf16>
    %73 = vector.shape_cast %70 : vector<16x32xbf16> to vector<1x16x32xbf16>
    tpu.vector_store %arg5[%c0_67, %c0_68, %c0_69], %73 {strides = array<i32>} : memref<1x16x32xbf16, #tpu.memory_space<vmem>>, vector<1x16x32xbf16>,
    return
  }
  func.func @transform_0(%arg0: i32) -> (i32, i32, i32, i32) {
    %c0_i32 = arith.constant 0 : i32
    %c0_i32_0 = arith.constant 0 : i32
    %c0_i32_1 = arith.constant 0 : i32
    %c0_i32_2 = arith.constant 0 : i32
    return %arg0, %c0_i32, %c0_i32_0, %c0_i32_1 : i32, i32, i32, i32
  }
  func.func @transform_1(%arg0: i32) -> (i32, i32, i32) {
    %c0_i32 = arith.constant 0 : i32
    %c0_i32_0 = arith.constant 0 : i32
    %c0_i32_1 = arith.constant 0 : i32
    %c0_i32_2 = arith.constant 0 : i32
    return %c0_i32, %c0_i32_0, %c0_i32_1 : i32, i32, i32
  }
  func.func @transform_2(%arg0: i32) -> (i32, i32) {
    %c0_i32 = arith.constant 0 : i32
    %c0_i32_0 = arith.constant 0 : i32
    %c0_i32_1 = arith.constant 0 : i32
    return %c0_i32, %c0_i32_0 : i32, i32
  }
  func.func @transform_3(%arg0: i32) -> (i32, i32) {
    %c0_i32 = arith.constant 0 : i32
    %c0_i32_0 = arith.constant 0 : i32
    %c0_i32_1 = arith.constant 0 : i32
    return %c0_i32, %c0_i32_0 : i32, i32
  }
  func.func @transform_4(%arg0: i32) -> (i32, i32, i32) {
    %c0_i32 = arith.constant 0 : i32
    %c0_i32_0 = arith.constant 0 : i32
    %c0_i32_1 = arith.constant 0 : i32
    return %arg0, %c0_i32, %c0_i32_0 : i32, i32, i32
  }
}

module attributes {stable_mosaic.version = 11 : i64} {
  func.func @_tail_kernel(%arg0: i32, %arg1: memref<32x32xbf16, #tpu.memory_space<vmem>>, %arg2: memref<32x64xbf16, #tpu.memory_space<vmem>>, %arg3: memref<32x256xbf16, #tpu.memory_space<vmem>>, %arg4: memref<64x256xbf16, #tpu.memory_space<vmem>>, %arg5: memref<1x256xf32, #tpu.memory_space<vmem>>, %arg6: memref<1x256xf32, #tpu.memory_space<vmem>>, %arg7: memref<1x256xf32, #tpu.memory_space<vmem>>, %arg8: memref<1x256xf32, #tpu.memory_space<vmem>>, %arg9: memref<32x256xf32, #tpu.memory_space<vmem>>) attributes {dimension_semantics = [#tpu.dimension_semantics<parallel>], iteration_bounds = array<i64: 1>, scalar_prefetch = 0 : i64, scratch_operands = 0 : i64, tpu.core_type = #tpu.core_type<tc>, window_params = [{transform_indices = @transform_0, window_bounds = array<i64: 32, 32>}, {transform_indices = @transform_1, window_bounds = array<i64: 32, 64>}, {pipeline_mode = #tpu.pipeline_mode<synchronous>, transform_indices = @transform_2, window_bounds = array<i64: 32, 256>}, {pipeline_mode = #tpu.pipeline_mode<synchronous>, transform_indices = @transform_3, window_bounds = array<i64: 64, 256>}, {pipeline_mode = #tpu.pipeline_mode<synchronous>, transform_indices = @transform_4, window_bounds = array<i64: 1, 256>}, {pipeline_mode = #tpu.pipeline_mode<synchronous>, transform_indices = @transform_5, window_bounds = array<i64: 1, 256>}, {pipeline_mode = #tpu.pipeline_mode<synchronous>, transform_indices = @transform_6, window_bounds = array<i64: 1, 256>}, {pipeline_mode = #tpu.pipeline_mode<synchronous>, transform_indices = @transform_7, window_bounds = array<i64: 1, 256>}, {transform_indices = @transform_8, window_bounds = array<i64: 32, 256>}]} {
    %c0 = arith.constant 0 : index
    %c0_0 = arith.constant 0 : index
    %0 = vector.load %arg1[%c0, %c0_0] : memref<32x32xbf16, #tpu.memory_space<vmem>>, vector<32x32xbf16>
    %c0_1 = arith.constant 0 : index
    %c0_2 = arith.constant 0 : index
    %1 = vector.load %arg3[%c0_1, %c0_2] : memref<32x256xbf16, #tpu.memory_space<vmem>>, vector<32x256xbf16>
    %cst = arith.constant dense<0.000000e+00> : vector<32x256xf32>
    %2 = tpu.matmul %0, %1, %cst {dimension_numbers = #tpu.dot_dimension_numbers<[1], [0], [0], [1], [0, 0, 1, 1], [], []>} : vector<32x32xbf16>, vector<32x256xbf16>, vector<32x256xf32> -> vector<32x256xf32>
    %c0_3 = arith.constant 0 : index
    %c0_4 = arith.constant 0 : index
    %3 = vector.load %arg5[%c0_3, %c0_4] : memref<1x256xf32, #tpu.memory_space<vmem>>, vector<1x256xf32>
    %4 = vector.broadcast %3 : vector<1x256xf32> to vector<32x256xf32>
    %5 = arith.mulf %2, %4 : vector<32x256xf32>
    %c0_5 = arith.constant 0 : index
    %c0_6 = arith.constant 0 : index
    %6 = vector.load %arg6[%c0_5, %c0_6] : memref<1x256xf32, #tpu.memory_space<vmem>>, vector<1x256xf32>
    %7 = vector.broadcast %6 : vector<1x256xf32> to vector<32x256xf32>
    %8 = arith.addf %5, %7 : vector<32x256xf32>
    %c0_7 = arith.constant 0 : index
    %c0_8 = arith.constant 0 : index
    %9 = vector.load %arg2[%c0_7, %c0_8] : memref<32x64xbf16, #tpu.memory_space<vmem>>, vector<32x64xbf16>
    %c0_9 = arith.constant 0 : index
    %c0_10 = arith.constant 0 : index
    %10 = vector.load %arg4[%c0_9, %c0_10] : memref<64x256xbf16, #tpu.memory_space<vmem>>, vector<64x256xbf16>
    %cst_11 = arith.constant dense<0.000000e+00> : vector<32x256xf32>
    %11 = tpu.matmul %9, %10, %cst_11 {dimension_numbers = #tpu.dot_dimension_numbers<[1], [0], [0], [1], [0, 0, 1, 1], [], []>} : vector<32x64xbf16>, vector<64x256xbf16>, vector<32x256xf32> -> vector<32x256xf32>
    %c0_12 = arith.constant 0 : index
    %c0_13 = arith.constant 0 : index
    %12 = vector.load %arg7[%c0_12, %c0_13] : memref<1x256xf32, #tpu.memory_space<vmem>>, vector<1x256xf32>
    %13 = vector.broadcast %12 : vector<1x256xf32> to vector<32x256xf32>
    %14 = arith.mulf %11, %13 : vector<32x256xf32>
    %c0_14 = arith.constant 0 : index
    %c0_15 = arith.constant 0 : index
    %15 = vector.load %arg8[%c0_14, %c0_15] : memref<1x256xf32, #tpu.memory_space<vmem>>, vector<1x256xf32>
    %16 = vector.broadcast %15 : vector<1x256xf32> to vector<32x256xf32>
    %17 = arith.addf %14, %16 : vector<32x256xf32>
    %18 = arith.addf %8, %17 : vector<32x256xf32>
    %cst_16 = arith.constant 0.000000e+00 : f32
    %19 = vector.broadcast %cst_16 : f32 to vector<32x256xf32>
    %20 = arith.maximumf %18, %19 : vector<32x256xf32>
    %c0_17 = arith.constant 0 : index
    %c0_18 = arith.constant 0 : index
    %21 = vector.load %arg9[%c0_17, %c0_18] : memref<32x256xf32, #tpu.memory_space<vmem>>, vector<32x256xf32>
    tpu.vector_store %arg9[%c0_17, %c0_18], %20 {strides = array<i32>} : memref<32x256xf32, #tpu.memory_space<vmem>>, vector<32x256xf32>,
    return
  }
  func.func @transform_0(%arg0: i32) -> (i32, i32) {
    %c0_i32 = arith.constant 0 : i32
    %c0_i32_0 = arith.constant 0 : i32
    return %arg0, %c0_i32 : i32, i32
  }
  func.func @transform_1(%arg0: i32) -> (i32, i32) {
    %c0_i32 = arith.constant 0 : i32
    %c0_i32_0 = arith.constant 0 : i32
    return %arg0, %c0_i32 : i32, i32
  }
  func.func @transform_2(%arg0: i32) -> (i32, i32) {
    %c0_i32 = arith.constant 0 : i32
    %c0_i32_0 = arith.constant 0 : i32
    %c0_i32_1 = arith.constant 0 : i32
    return %c0_i32, %c0_i32_0 : i32, i32
  }
  func.func @transform_3(%arg0: i32) -> (i32, i32) {
    %c0_i32 = arith.constant 0 : i32
    %c0_i32_0 = arith.constant 0 : i32
    %c0_i32_1 = arith.constant 0 : i32
    return %c0_i32, %c0_i32_0 : i32, i32
  }
  func.func @transform_4(%arg0: i32) -> (i32, i32) {
    %c0_i32 = arith.constant 0 : i32
    %c0_i32_0 = arith.constant 0 : i32
    %c0_i32_1 = arith.constant 0 : i32
    return %c0_i32, %c0_i32_0 : i32, i32
  }
  func.func @transform_5(%arg0: i32) -> (i32, i32) {
    %c0_i32 = arith.constant 0 : i32
    %c0_i32_0 = arith.constant 0 : i32
    %c0_i32_1 = arith.constant 0 : i32
    return %c0_i32, %c0_i32_0 : i32, i32
  }
  func.func @transform_6(%arg0: i32) -> (i32, i32) {
    %c0_i32 = arith.constant 0 : i32
    %c0_i32_0 = arith.constant 0 : i32
    %c0_i32_1 = arith.constant 0 : i32
    return %c0_i32, %c0_i32_0 : i32, i32
  }
  func.func @transform_7(%arg0: i32) -> (i32, i32) {
    %c0_i32 = arith.constant 0 : i32
    %c0_i32_0 = arith.constant 0 : i32
    %c0_i32_1 = arith.constant 0 : i32
    return %c0_i32, %c0_i32_0 : i32, i32
  }
  func.func @transform_8(%arg0: i32) -> (i32, i32) {
    %c0_i32 = arith.constant 0 : i32
    %c0_i32_0 = arith.constant 0 : i32
    return %arg0, %c0_i32 : i32, i32
  }
}

</mosaic_0001>

<bundles_post_ra>
// kernel: bottleneck_forward.3
= control target key start
LH: loop header
LB: loop body
LE: loop exit
PB: predicated region body
PF: predicated region fallthrough
CT: control target
= control target key end

     0   :  { %vm106_vm0 = vcmask 523264   ;;  %vm252_vm1 = vcmask 257024   ;;  %s530_s1 = inlined_call_operand.vmem [shape: bf16[64,32], index: 1, kind: input, shape index: {}]   ;;  %s531_s2 = inlined_call_operand.vmem [shape: f32[1,32], index: 2, kind: input, shape index: {}]   ;;  %s532_s3 = inlined_call_operand.vmem [shape: f32[1,32], index: 3, kind: input, shape index: {}]   ;;  %s533_s0 = inlined_call_operand.vmem [shape: bf16[128,64], index: 0, kind: input, shape index: {}]   ;;  %s534_s4 = inlined_call_operand.vmem [shape: bf16[128,32], index: 4, kind: output, shape index: {}]  }
   0x1   :  { %v340_v0 = vld [vmem:[%s530_s1 + $0x18] sm:$0xff]  ;;  %v339_v1 = vld [vmem:[%s530_s1 + $0x10] sm:$0xff]  ;;  %v338_v2 = vld [vmem:[%s530_s1 + $0x8] sm:$0xff] }
   0x2   :  { %135 = vmatpush.bf16.msra.mxu0 %v340_v0  ;;  %341 = vmatpush.bf16.msra.mxu1 %v340_v0  ;;  %v337_v3 = vld [vmem:[%s530_s1] sm:$0xff]  ;;  %v331_v5 = vld [vmem:[%s533_s0 + $0x10] sm:$0xff]  ;;  %v330_v8 = vld [vmem:[%s533_s0 + $0x8] sm:$0xff] }
   0x3   :  { %342 = vmatpush.bf16.msra.mxu2 %v340_v0  ;;  %343 = vmatpush.bf16.msra.mxu3 %v340_v0  ;;  %v329_v4 = vld [vmem:[%s533_s0] sm:$0xff]  ;;  %v335_v7 = vld [vmem:[%s533_s0 + $0x30] sm:$0xff]  ;;  %v332_v9 = vld [vmem:[%s533_s0 + $0x18] sm:$0xff] }
   0x4   :  { %v333_v6 = vld [vmem:[%s533_s0 + $0x20] sm:$0xff]  ;;  %v334_v10 = vld [vmem:[%s533_s0 + $0x28] sm:$0xff]  ;;  %v336_v11 = vld [vmem:[%s533_s0 + $0x38] sm:$0xff] }
   0x5   :  { %v427_v12 = vld [vmem:[%s531_s2] ss:$0 sm:$0xff] }
   0x6   :  { %136 = vmatpush.bf16.msra.mxu0 %v339_v1  ;;  %344 = vmatpush.bf16.msra.mxu1 %v339_v1  ;;  %v432_v13 = vld [vmem:[%s532_s3] ss:$0 sm:$0xff] }
   0x7   :  { %345 = vmatpush.bf16.msra.mxu2 %v339_v1  ;;  %346 = vmatpush.bf16.msra.mxu3 %v339_v1 }
   0xa   :  { %137 = vmatpush.bf16.msra.mxu0 %v338_v2  ;;  %347 = vmatpush.bf16.msra.mxu1 %v338_v2 }
   0xb   :  { %348 = vmatpush.bf16.msra.mxu2 %v338_v2  ;;  %349 = vmatpush.bf16.msra.mxu3 %v338_v2 }
   0xe   :  { %138 = vmatpush.bf16.msra.mxu0 %v337_v3  ;;  %350 = vmatpush.bf16.msra.mxu1 %v337_v3 }
   0xf   :  { %351 = vmatpush.bf16.msra.mxu2 %v337_v3  ;;  %352 = vmatpush.bf16.msra.mxu3 %v337_v3 }
  0x11   :  { %321 = vmatmul.msk.bf16.vlgmr.msra.gmra.mxu0 %vm106_vm0, %v329_v4  ;;  %323 = vmatmul.msk.bf16.vlgmr.msra.gmra.mxu1 %vm106_vm0, %v331_v5 }
  0x12   :  { %325 = vmatmul.msk.bf16.vlgmr.msra.gmra.mxu2 %vm106_vm0, %v333_v6  ;;  %327 = vmatmul.msk.bf16.vlgmr.msra.gmra.mxu3 %vm106_vm0, %v335_v7 }
  0x21   :  { %322 = vmatmul.msk.bf16.gmra.mxu0 %vm106_vm0, %v330_v8  ;;  %324 = vmatmul.msk.bf16.gmra.mxu1 %vm106_vm0, %v332_v9 }
  0x22   :  { %326 = vmatmul.msk.bf16.gmra.mxu2 %vm106_vm0, %v334_v10  ;;  %328 = vmatmul.msk.bf16.gmra.mxu3 %vm106_vm0, %v336_v11 }
  0x8e   :  { %v140_v14 = vpop.f32.mrf.mxu0  ;;  %v150_v15 = vpop.f32.mrf.mxu1 }
  0x8f   :  { %v184_v16 = vmul.f32 %v427_v12, %v140_v14  ;;  %v188_v17 = vmul.f32 %v427_v12, %v150_v15 }
  0x91   :  { %v204_v18 = vadd.f32 %v432_v13, %v184_v16  ;;  %v208_v19 = vadd.f32 %v432_v13, %v188_v17 }
  0x93   :  { %v220_v20 = vmax.f32 %v204_v18, 0.0  ;;  %v224_v21 = vmax.f32 %v208_v19, 0.0 }
  0x95   :  { %v236_v22 = vpack.c.bf16 %v220_v20, %v220_v20  ;;  %v240_v23 = vpack.c.bf16 %v224_v21, %v224_v21  ;;  %v160_v24 = vpop.f32.mrf.mxu2  ;;  %v170_v25 = vpop.f32.mrf.mxu3 }
  0x96   :  { %v192_v26 = vmul.f32 %v427_v12, %v160_v24  ;;  %v196_v27 = vmul.f32 %v427_v12, %v170_v25  ;;  %v142_v28 = vpop.f32.mrf.mxu0  ;;  %v152_v29 = vpop.f32.mrf.mxu1 }
  0x97   :  { %253 = vst.msk [vmem:[%s534_s4] sm:$0xf] %vm252_vm1, %v236_v22  ;;  %v185_v30 = vmul.f32 %v427_v12, %v142_v28  ;;  %v189_v31 = vmul.f32 %v427_v12, %v152_v29 }
  0x98   :  { %257 = vst.msk [vmem:[%s534_s4 + $0x10] sm:$0xf] %vm252_vm1, %v240_v23  ;;  %v212_v32 = vadd.f32 %v432_v13, %v192_v26  ;;  %v216_v33 = vadd.f32 %v432_v13, %v196_v27 }
  0x99   :  { %v205_v34 = vadd.f32 %v432_v13, %v185_v30  ;;  %v209_v35 = vadd.f32 %v432_v13, %v189_v31 }
  0x9a   :  { %v228_v36 = vmax.f32 %v212_v32, 0.0  ;;  %v232_v37 = vmax.f32 %v216_v33, 0.0 }
  0x9b   :  { %v221_v38 = vmax.f32 %v205_v34, 0.0  ;;  %v225_v39 = vmax.f32 %v209_v35, 0.0 }
  0x9c   :  { %v244_v40 = vpack.c.bf16 %v228_v36, %v228_v36  ;;  %v248_v41 = vpack.c.bf16 %v232_v37, %v232_v37 }
  0x9d   :  { %v237_v42 = vpack.c.bf16 %v221_v38, %v221_v38  ;;  %v241_v43 = vpack.c.bf16 %v225_v39, %v225_v39  ;;  %v162_v44 = vpop.f32.mrf.mxu2  ;;  %v172_v45 = vpop.f32.mrf.mxu3 }
  0x9e   :  { %261 = vst.msk [vmem:[%s534_s4 + $0x20] sm:$0xf] %vm252_vm1, %v244_v40  ;;  %v193_v46 = vmul.f32 %v427_v12, %v162_v44  ;;  %v197_v47 = vmul.f32 %v427_v12, %v172_v45  ;;  %v145_v48 = vpop.f32.mrf.mxu0  ;;  %v155_v49 = vpop.f32.mrf.mxu1 }
  0x9f   :  { %265 = vst.msk [vmem:[%s534_s4 + $0x30] sm:$0xf] %vm252_vm1, %v248_v41  ;;  %v186_v50 = vmul.f32 %v427_v12, %v145_v48  ;;  %v190_v51 = vmul.f32 %v427_v12, %v155_v49 }
  0xa0   :  { %254 = vst.msk [vmem:[%s534_s4 + $0x4] sm:$0xf] %vm252_vm1, %v237_v42  ;;  %v213_v52 = vadd.f32 %v432_v13, %v193_v46  ;;  %v217_v53 = vadd.f32 %v432_v13, %v197_v47 }
  0xa1   :  { %258 = vst.msk [vmem:[%s534_s4 + $0x14] sm:$0xf] %vm252_vm1, %v241_v43  ;;  %v206_v54 = vadd.f32 %v432_v13, %v186_v50  ;;  %v210_v55 = vadd.f32 %v432_v13, %v190_v51 }
  0xa2   :  { %v229_v56 = vmax.f32 %v213_v52, 0.0  ;;  %v233_v57 = vmax.f32 %v217_v53, 0.0 }
  0xa3   :  { %v222_v58 = vmax.f32 %v206_v54, 0.0  ;;  %v226_v59 = vmax.f32 %v210_v55, 0.0 }
  0xa4   :  { %v245_v60 = vpack.c.bf16 %v229_v56, %v229_v56  ;;  %v249_v61 = vpack.c.bf16 %v233_v57, %v233_v57 }
  0xa5   :  { %v238_v62 = vpack.c.bf16 %v222_v58, %v222_v58  ;;  %v242_v63 = vpack.c.bf16 %v226_v59, %v226_v59  ;;  %v165_v0 = vpop.f32.mrf.mxu2  ;;  %v175_v1 = vpop.f32.mrf.mxu3 }
  0xa6   :  { %262 = vst.msk [vmem:[%s534_s4 + $0x24] sm:$0xf] %vm252_vm1, %v245_v60  ;;  %v194_v2 = vmul.f32 %v427_v12, %v165_v0  ;;  %v198_v3 = vmul.f32 %v427_v12, %v175_v1  ;;  %v147_v4 = vpop.f32.mrf.mxu0  ;;  %v157_v5 = vpop.f32.mrf.mxu1 }
  0xa7   :  { %266 = vst.msk [vmem:[%s534_s4 + $0x34] sm:$0xf] %vm252_vm1, %v249_v61  ;;  %v187_v6 = vmul.f32 %v427_v12, %v147_v4  ;;  %v191_v7 = vmul.f32 %v427_v12, %v157_v5 }
  0xa8   :  { %255 = vst.msk [vmem:[%s534_s4 + $0x8] sm:$0xf] %vm252_vm1, %v238_v62  ;;  %v214_v8 = vadd.f32 %v432_v13, %v194_v2  ;;  %v218_v9 = vadd.f32 %v432_v13, %v198_v3 }
  0xa9   :  { %259 = vst.msk [vmem:[%s534_s4 + $0x18] sm:$0xf] %vm252_vm1, %v242_v63  ;;  %v207_v10 = vadd.f32 %v432_v13, %v187_v6  ;;  %v211_v11 = vadd.f32 %v432_v13, %v191_v7 }
  0xaa   :  { %v230_v14 = vmax.f32 %v214_v8, 0.0  ;;  %v234_v15 = vmax.f32 %v218_v9, 0.0 }
  0xab   :  { %v223_v16 = vmax.f32 %v207_v10, 0.0  ;;  %v227_v17 = vmax.f32 %v211_v11, 0.0 }
  0xac   :  { %v246_v18 = vpack.c.bf16 %v230_v14, %v230_v14  ;;  %v250_v19 = vpack.c.bf16 %v234_v15, %v234_v15 }
  0xad   :  { %v239_v20 = vpack.c.bf16 %v223_v16, %v223_v16  ;;  %v243_v21 = vpack.c.bf16 %v227_v17, %v227_v17  ;;  %v167_v22 = vpop.f32.mrf.mxu2  ;;  %v177_v23 = vpop.f32.mrf.mxu3 }
  0xae   :  { %263 = vst.msk [vmem:[%s534_s4 + $0x28] sm:$0xf] %vm252_vm1, %v246_v18  ;;  %v195_v24 = vmul.f32 %v427_v12, %v167_v22  ;;  %v199_v25 = vmul.f32 %v427_v12, %v177_v23 }
  0xaf   :  { %267 = vst.msk [vmem:[%s534_s4 + $0x38] sm:$0xf] %vm252_vm1, %v250_v19 }
  0xb0   :  { %256 = vst.msk [vmem:[%s534_s4 + $0xc] sm:$0xf] %vm252_vm1, %v239_v20  ;;  %v215_v26 = vadd.f32 %v432_v13, %v195_v24  ;;  %v219_v27 = vadd.f32 %v432_v13, %v199_v25 }
  0xb1   :  { %260 = vst.msk [vmem:[%s534_s4 + $0x1c] sm:$0xf] %vm252_vm1, %v243_v21 }
  0xb2   :  { %v231_v12 = vmax.f32 %v215_v26, 0.0  ;;  %v235_v28 = vmax.f32 %v219_v27, 0.0 }
  0xb4   :  { %v247_v29 = vpack.c.bf16 %v231_v12, %v231_v12  ;;  %v251_v30 = vpack.c.bf16 %v235_v28, %v235_v28 }
  0xb6   :  { %264 = vst.msk [vmem:[%s534_s4 + $0x2c] sm:$0xf] %vm252_vm1, %v247_v29 }
  0xb7   :  { %268 = vst.msk [vmem:[%s534_s4 + $0x3c] sm:$0xf] %vm252_vm1, %v251_v30 }

// kernel: bottleneck_forward.5
= control target key start
LH: loop header
LB: loop body
LE: loop exit
PB: predicated region body
PF: predicated region fallthrough
CT: control target
= control target key end

     0   :  { %vm68_vm0 = vcmask 261120   ;;  %vm203_vm1 = vcmask 523264   ;;  %s579_s3 = inlined_call_operand.vmem [shape: bf16[64,256], index: 3, kind: input, shape index: {}]   ;;  %s580_s2 = inlined_call_operand.vmem [shape: bf16[32,256], index: 2, kind: input, shape index: {}]   ;;  %s581_s0 = inlined_call_operand.vmem [shape: bf16[32,32], index: 0, kind: input, shape index: {}]   ;;  %s582_s1 = inlined_call_operand.vmem [shape: bf16[32,64], index: 1, kind: input, shape index: {}]   ;;  %s583_s4 = inlined_call_operand.vmem [shape: f32[1,256], index: 4, kind: input, shape index: {}]   ;;  %s584_s5 = inlined_call_operand.vmem [shape: f32[1,256], index: 5, kind: input, shape index: {}]   ;;  %s585_s6 = inlined_call_operand.vmem [shape: f32[1,256], index: 6, kind: input, shape index: {}]   ;;  %s586_s7 = inlined_call_operand.vmem [shape: f32[1,256], index: 7, kind: input, shape index: {}]   ;;  %s587_s8 = inlined_call_operand.vmem [shape: f32[32,256], index: 8, kind: output, shape index: {}]  }
   0x1   :  { %v366_v0 = vld [vmem:[%s579_s3 + $0x30] sm:$0xf]  ;;  %v391_v1 = vld [vmem:[%s579_s3 + $0x34] sm:$0xf0]  ;;  %v390_v2 = vld [vmem:[%s579_s3 + $0x34] sm:$0xf] }
   0x2   :  { %v367_v3 = vor.u32 %v391_v1, %v366_v0  ;;  %v368_v4 = vld [vmem:[%s579_s3 + $0x38] sm:$0xf0]  ;;  %v358_v5 = vld [vmem:[%s579_s3 + $0x20] sm:$0xf]  ;;  %v389_v6 = vld [vmem:[%s579_s3 + $0x24] sm:$0xf0] }
   0x3   :  { %v371_v7 = vor.u32 %v390_v2, %v368_v4  ;;  %v388_v8 = vld [vmem:[%s579_s3 + $0x24] sm:$0xf]  ;;  %v360_v9 = vld [vmem:[%s579_s3 + $0x28] sm:$0xf0]  ;;  %v322_v10 = vld [vmem:[%s580_s2 + $0x10] sm:$0xf]  ;;  %v359_v11 = vor.u32 %v389_v6, %v358_v5 }
   0x4   :  { %214 = vmatpush.bf16.msra.mxu2 %v367_v3  ;;  %v381_v12 = vld [vmem:[%s580_s2 + $0x14] sm:$0xf0]  ;;  %v380_v13 = vld [vmem:[%s580_s2 + $0x14] sm:$0xf]  ;;  %v324_v14 = vld [vmem:[%s580_s2 + $0x18] sm:$0xf0]  ;;  %v363_v15 = vor.u32 %v388_v8, %v360_v9 }
   0x5   :  { %233 = vmatpush.bf16.msra.mxu3 %v371_v7  ;;  %v323_v16 = vor.u32 %v381_v12, %v322_v10  ;;  %v327_v17 = vor.u32 %v380_v13, %v324_v14  ;;  %v350_v18 = vld [vmem:[%s579_s3 + $0x10] sm:$0xf]  ;;  %v387_v19 = vld [vmem:[%s579_s3 + $0x14] sm:$0xf0]  ;;  %v386_v20 = vld [vmem:[%s579_s3 + $0x14] sm:$0xf] }
   0x6   :  { %v352_v21 = vld [vmem:[%s579_s3 + $0x18] sm:$0xf0]  ;;  %v314_v22 = vld [vmem:[%s580_s2] sm:$0xf]  ;;  %v379_v23 = vld [vmem:[%s580_s2 + $0x4] sm:$0xf0]  ;;  %v351_v27 = vor.u32 %v387_v19, %v350_v18 }
   0x7   :  { %81 = vmatpush.bf16.msra.mxu0 %v323_v16  ;;  %100 = vmatpush.bf16.msra.mxu1 %v327_v17  ;;  %v315_v24 = vor.u32 %v379_v23, %v314_v22  ;;  %v378_v25 = vld [vmem:[%s580_s2 + $0x4] sm:$0xf]  ;;  %v316_v26 = vld [vmem:[%s580_s2 + $0x8] sm:$0xf0]  ;;  %v355_v29 = vor.u32 %v386_v20, %v352_v21  ;;  %v342_v30 = vld [vmem:[%s579_s3] sm:$0xf] }
   0x8   :  { %215 = vmatpush.bf16.msra.mxu2 %v359_v11  ;;  %v319_v28 = vor.u32 %v378_v25, %v316_v26  ;;  %v385_v31 = vld [vmem:[%s579_s3 + $0x4] sm:$0xf0]  ;;  %v384_v32 = vld [vmem:[%s579_s3 + $0x4] sm:$0xf]  ;;  %v344_v33 = vld [vmem:[%s579_s3 + $0x8] sm:$0xf0] }
   0x9   :  { %234 = vmatpush.bf16.msra.mxu3 %v363_v15  ;;  %v376_v34 = vld [vmem:[%s581_s0] sm:$0xff]  ;;  %v343_v35 = vor.u32 %v385_v31, %v342_v30  ;;  %v347_v36 = vor.u32 %v384_v32, %v344_v33  ;;  %v377_v38 = vld [vmem:[%s581_s0 + $0x8] sm:$0xff] }
   0xa   :  { %v382_v37 = vld [vmem:[%s582_s1] sm:$0xff]  ;;  %v383_v39 = vld [vmem:[%s582_s1 + $0x8] sm:$0xff] }
   0xb   :  { %82 = vmatpush.bf16.msra.mxu0 %v315_v24  ;;  %101 = vmatpush.bf16.msra.mxu1 %v319_v28  ;;  %v113_v41 = vld [vmem:[%s583_s4] sm:$0x3] }
   0xc   :  { %216 = vmatpush.bf16.msra.mxu2 %v351_v27  ;;  %v528_v43 = vperm.slane %v113_v41, 0  ;;  %v127_v44 = vld [vmem:[%s584_s5] sm:$0x3]  ;;  %v116_v45 = vperm.slane %v113_v41, 1 }
   0xd   :  { %235 = vmatpush.bf16.msra.mxu3 %v355_v29  ;;  %v248_v46 = vld [vmem:[%s585_s6] sm:$0x3]  ;;  %v540_v49 = vperm.slane %v127_v44, 0  ;;  %v542_v52 = vperm.slane %v127_v44, 1 }
   0xe   :  { %328 = vmatmul.msk.bf16.vlgmr.msra.gmra.mxu0 %vm68_vm0, %v376_v34  ;;  %330 = vmatmul.msk.bf16.vlgmr.msra.gmra.mxu1 %vm68_vm0, %v376_v34  ;;  %v262_v47 = vld [vmem:[%s586_s7] sm:$0x3]  ;;  %v250_v50 = vperm.slane %v248_v46, 0  ;;  %v251_v53 = vperm.slane %v248_v46, 1 }
   0xf   :  { %v264_v54 = vperm.slane %v262_v47, 0  ;;  %v265_v57 = vperm.slane %v262_v47, 1 }
  0x10   :  { %217 = vmatpush.bf16.msra.mxu2 %v343_v35 }
  0x11   :  { %236 = vmatpush.bf16.msra.mxu3 %v347_v36 }
  0x13   :  { %372 = vmatmul.msk.bf16.vlgmr.msra.gmra.mxu2 %vm203_vm1, %v382_v37 }
  0x14   :  { %374 = vmatmul.msk.bf16.vlgmr.msra.gmra.mxu3 %vm203_vm1, %v382_v37 }
  0x1e   :  { %329 = vmatmul.msk.bf16.gmra.mxu0 %vm68_vm0, %v377_v38  ;;  %331 = vmatmul.msk.bf16.gmra.mxu1 %vm68_vm0, %v377_v38 }
  0x23   :  { %373 = vmatmul.msk.bf16.gmra.mxu2 %vm203_vm1, %v383_v39 }
  0x24   :  { %375 = vmatmul.msk.bf16.gmra.mxu3 %vm203_vm1, %v383_v39 }
  0x8b   :  { %v84_v40 = vpop.f32.mrf.mxu0  ;;  %v103_v42 = vpop.f32.mrf.mxu1 }
  0x8c   :  { %v119_v48 = vmul.f32 %v528_v43, %v84_v40  ;;  %v120_v51 = vmul.f32 %v116_v45, %v103_v42 }
  0x8e   :  { %v133_v58 = vadd.f32 %v540_v49, %v119_v48  ;;  %v134_v62 = vadd.f32 %v542_v52, %v120_v51 }
  0x93   :  { %v86_v55 = vpop.f32.mrf.mxu0  ;;  %v105_v59 = vpop.f32.mrf.mxu1 }
  0x94   :  { %v121_v4 = vmul.f32 %v528_v43, %v86_v55  ;;  %v122_v6 = vmul.f32 %v116_v45, %v105_v59 }
  0x96   :  { %v219_v56 = vpop.f32.mrf.mxu2  ;;  %v135_v13 = vadd.f32 %v540_v49, %v121_v4  ;;  %v136_v16 = vadd.f32 %v542_v52, %v122_v6 }
  0x97   :  { %v254_v60 = vmul.f32 %v250_v50, %v219_v56  ;;  %v238_v61 = vpop.f32.mrf.mxu3 }
  0x98   :  { %v255_v63 = vmul.f32 %v251_v53, %v238_v61 }
  0x99   :  { %v268_v0 = vadd.f32 %v264_v54, %v254_v60 }
  0x9a   :  { %v269_v1 = vadd.f32 %v265_v57, %v255_v63 }
  0x9b   :  { %v276_v2 = vadd.f32 %v268_v0, %v133_v58  ;;  %v89_v11 = vpop.f32.mrf.mxu0  ;;  %v108_v14 = vpop.f32.mrf.mxu1 }
  0x9c   :  { %v277_v3 = vadd.f32 %v269_v1, %v134_v62  ;;  %v123_v18 = vmul.f32 %v528_v43, %v89_v11  ;;  %v124_v20 = vmul.f32 %v116_v45, %v108_v14 }
  0x9d   :  { %v284_v5 = vmax.f32 %v276_v2, 0.0 }
  0x9e   :  { %v285_v7 = vmax.f32 %v277_v3, 0.0  ;;  %v221_v8 = vpop.f32.mrf.mxu2  ;;  %v137_v25 = vadd.f32 %v540_v49, %v123_v18  ;;  %v138_v28 = vadd.f32 %v542_v52, %v124_v20 }
  0x9f   :  { %292 = vst [vmem:[%s587_s8] sm:$0xff] %v284_v5  ;;  %v256_v9 = vmul.f32 %v250_v50, %v221_v8  ;;  %v240_v10 = vpop.f32.mrf.mxu3 }
  0xa0   :  { %293 = vst [vmem:[%s587_s8 + $0x8] sm:$0xff] %v285_v7  ;;  %v257_v12 = vmul.f32 %v251_v53, %v240_v10 }
  0xa1   :  { %v270_v15 = vadd.f32 %v264_v54, %v256_v9 }
  0xa2   :  { %v271_v17 = vadd.f32 %v265_v57, %v257_v12 }
  0xa3   :  { %v278_v19 = vadd.f32 %v270_v15, %v135_v13  ;;  %v91_v31 = vpop.f32.mrf.mxu0  ;;  %v110_v33 = vpop.f32.mrf.mxu1 }
  0xa4   :  { %v279_v21 = vadd.f32 %v271_v17, %v136_v16  ;;  %v125_v36 = vmul.f32 %v528_v43, %v91_v31  ;;  %v126_v38 = vmul.f32 %v116_v45, %v110_v33 }
  0xa5   :  { %v286_v22 = vmax.f32 %v278_v19, 0.0 }
  0xa6   :  { %v287_v23 = vmax.f32 %v279_v21, 0.0  ;;  %v224_v24 = vpop.f32.mrf.mxu2  ;;  %v139_v46 = vadd.f32 %v540_v49, %v125_v36  ;;  %v140_v43 = vadd.f32 %v542_v52, %v126_v38 }
  0xa7   :  { %294 = vst [vmem:[%s587_s8 + $0x10] sm:$0xff] %v286_v22  ;;  %v258_v26 = vmul.f32 %v250_v50, %v224_v24  ;;  %v243_v27 = vpop.f32.mrf.mxu3 }
  0xa8   :  { %295 = vst [vmem:[%s587_s8 + $0x18] sm:$0xff] %v287_v23  ;;  %v259_v29 = vmul.f32 %v251_v53, %v243_v27 }
  0xa9   :  { %v272_v30 = vadd.f32 %v264_v54, %v258_v26 }
  0xaa   :  { %v273_v32 = vadd.f32 %v265_v57, %v259_v29 }
  0xab   :  { %v280_v34 = vadd.f32 %v272_v30, %v137_v25 }
  0xac   :  { %v281_v35 = vadd.f32 %v273_v32, %v138_v28 }
  0xad   :  { %v288_v37 = vmax.f32 %v280_v34, 0.0 }
  0xae   :  { %v289_v39 = vmax.f32 %v281_v35, 0.0  ;;  %v226_v40 = vpop.f32.mrf.mxu2 }
  0xaf   :  { %296 = vst [vmem:[%s587_s8 + $0x20] sm:$0xff] %v288_v37  ;;  %v260_v41 = vmul.f32 %v250_v50, %v226_v40  ;;  %v245_v42 = vpop.f32.mrf.mxu3 }
  0xb0   :  { %297 = vst [vmem:[%s587_s8 + $0x28] sm:$0xff] %v289_v39  ;;  %v261_v44 = vmul.f32 %v251_v53, %v245_v42 }
  0xb1   :  { %v274_v47 = vadd.f32 %v264_v54, %v260_v41 }
  0xb2   :  { %v275_v48 = vadd.f32 %v265_v57, %v261_v44 }
  0xb3   :  { %v282_v45 = vadd.f32 %v274_v47, %v139_v46 }
  0xb4   :  { %v283_v51 = vadd.f32 %v275_v48, %v140_v43 }
  0xb5   :  { %v290_v55 = vmax.f32 %v282_v45, 0.0 }
  0xb6   :  { %v291_v56 = vmax.f32 %v283_v51, 0.0 }
  0xb7   :  { %298 = vst [vmem:[%s587_s8 + $0x30] sm:$0xff] %v290_v55 }
  0xb8   :  { %299 = vst [vmem:[%s587_s8 + $0x38] sm:$0xff] %v291_v56 }

// kernel: bottleneck_forward.4
= control target key start
LH: loop header
LB: loop body
LE: loop exit
PB: predicated region body
PF: predicated region fallthrough
CT: control target
= control target key end

     0   :  { %s1214_s15 = smov 0   ;;  %s1411_s0 = inlined_call_operand.vmem [shape: bf16[8,5,5,32], index: 0, kind: input, shape index: {}]   ;;  %s1412_s1 = inlined_call_operand.vmem [shape: bf16[9,32,32], index: 1, kind: input, shape index: {}]   ;;  %s1413_s2 = inlined_call_operand.vmem [shape: f32[1,32], index: 2, kind: input, shape index: {}]   ;;  %s1414_s3 = inlined_call_operand.vmem [shape: f32[1,32], index: 3, kind: input, shape index: {}]   ;;  %s1415_s4 = inlined_call_operand.vmem [shape: bf16[2,16,32], index: 4, kind: output, shape index: {}]  }
   0x1 LB: > { %s1220_s16 = sadd.s32 4294967295, %s1187_s15   ;;  %p1003_p0 = scmp.ge.s32.totalorder %s1187_s15, 1  ;;  %s1187_s15 = sphi %s1214_s15, %s14_s15  }
   0x2   : > { %p164_p1 = scmp.lt.s32.totalorder %s1187_s15, 3 }
   0x4   : > { %p165_p2 = pnand %p1003_p0, %p164_p1 }
   0x5   : > { %s1004_s21 = sshll.u32 (!%p165_p2), %s1220_s16, 2  ;;  %p198_p4 = scmp.lt.s32.totalorder (!%p165_p2), %s1220_s16, 1 }
   0x6   : > { %168 = sbr.rel (%p165_p2) target bundleno = 260 (0x104), region = 36  ;;  %p192_p3 = scmp.lt.s32.totalorder (!%p165_p2), %s1004_s21, 7 }
   0xb   : > { %v1155_v0 = vld [vmem:[%s1412_s1 + $0x18] sm:$0xff]  ;;  %v1157_v1 = vld [vmem:[%s1412_s1 + $0x28] sm:$0xff]  ;;  %v1154_v4 = vld [vmem:[%s1412_s1 + $0x10] sm:$0xff]  ;;  %s1423_s21 = smov (!%p192_p3, %s1004_s21), 7  ;;  %vm246_vm0 = vcmask 261120   ;;  %vm315_vm1 = vcmask 1041408  }
   0xc   : > { %v1153_v2 = vld [vmem:[%s1412_s1 + $0x8] sm:$0xff]  ;;  %v1159_v3 = vld [vmem:[%s1412_s1 + $0x38] sm:$0xff]  ;;  %255 = vmatpush.bf16.msra.mxu0 %v1155_v0  ;;  %437 = vmatpush.bf16.msra.mxu2 %v1157_v1  ;;  %v1156_v5 = vld [vmem:[%s1412_s1 + $0x20] sm:$0xff]  ;;  %s1170_s30 = smul.u32 20, %s1423_s21  ;;  %vm319_vm2 = vcmask 1043458   ;;  %s1425_s16 = smov (!%p198_p4, %s1220_s16), 1 }
   0xd   : > { %295 = vmatpush.bf16.msra.mxu1 %v1153_v2  ;;  %489 = vmatpush.bf16.msra.mxu3 %v1159_v3  ;;  %vm341_vm3 = vsmask.f32 1280  ;;  %v1152_v17 = vld [vmem:[%s1412_s1] sm:$0xff]  ;;  %vm342_vm4 = vsmask.f32 3336  ;;  %v1158_v19 = vld [vmem:[%s1412_s1 + $0x30] sm:$0xff] }
   0xe   : > { %s1246_s7 = scalar_lea.vmem %s1411_s0, %s1170_s30  ;;  %vm344_vm5 = vsmask.f32 5392  ;;  %vm346_vm6 = vsmask.f32 7448  ;;  %vm1276_vm7 = vmor %vm341_vm3, %vm342_vm4  ;;  %v1161_v56 = vld [vmem:[%s1412_s1 + $0x48] sm:$0xff]  ;;  %v1160_v0 = vld [vmem:[%s1412_s1 + $0x40] sm:$0xff] }
   0xf   : > { %v1008_v6 = vld [vmem:[%s1246_s7 + $0x14] sm:$0x3]  ;;  %v1009_v7 = vld [vmem:[%s1246_s7 + $0x18] sm:$0x3]  ;;  %v1010_v8 = vld [vmem:[%s1246_s7 + $0x1c] sm:$0x3] }
  0x10   : > { %256 = vmatpush.bf16.msra.mxu0 %v1154_v4  ;;  %438 = vmatpush.bf16.msra.mxu2 %v1156_v5  ;;  %v1011_v9 = vld [vmem:[%s1246_s7 + $0x20] sm:$0x3]  ;;  %223 = vst [vmem:[#allocation1] ss:$4 sm:$0xff] %v1008_v6  ;;  %v304_v11 = vld [vmem:[%s1246_s7 + $0x4] sm:$0x7]  ;;  %vm1284_vm8 = vmor %vm1276_vm7, %vm344_vm5 }
  0x11   : > { %226 = vst [vmem:[#allocation1 + $0x1] ss:$4 sm:$0xff] %v1009_v7  ;;  %v303_v10 = vld [vmem:[%s1246_s7] sm:$0x7]  ;;  %v305_v12 = vld [vmem:[%s1246_s7 + $0x8] sm:$0x7]  ;;  %296 = vmatpush.bf16.msra.mxu1 %v1152_v17  ;;  %490 = vmatpush.bf16.msra.mxu3 %v1158_v19  ;;  %vm1297_vm9 = vmor %vm1284_vm8, %vm346_vm6 }
  0x12   : > { %229 = vst [vmem:[#allocation1 + $0x2] ss:$4 sm:$0xff] %v1010_v8  ;;  %v306_v13 = vld [vmem:[%s1246_s7 + $0xc] sm:$0x7]  ;;  %v311_v14 = vrot.slane %v303_v10, 2  ;;  %v312_v15 = vrot.slane %v304_v11, 2 }
  0x13   : > { %232 = vst [vmem:[#allocation1 + $0x3] ss:$4 sm:$0xff] %v1011_v9  ;;  %v313_v16 = vrot.slane %v305_v12, 2  ;;  %v314_v18 = vrot.slane %v306_v13, 2  ;;  %v204_v27 = vld [vmem:[%s1246_s7] sm:$0x3] }
  0x14   : > { %v318_v20 = vsel %vm315_vm1, %v303_v10, %v311_v14  ;;  %v320_v21 = vsel %vm319_vm2, %v303_v10, %v311_v14  ;;  %v325_v22 = vsel %vm315_vm1, %v304_v11, %v312_v15  ;;  %v326_v23 = vsel %vm319_vm2, %v304_v11, %v312_v15  ;;  %v205_v28 = vld [vmem:[%s1246_s7 + $0x4] sm:$0x3]  ;;  %v206_v33 = vld [vmem:[%s1246_s7 + $0x8] sm:$0x3]  ;;  %v207_v34 = vld [vmem:[%s1246_s7 + $0xc] sm:$0x3]  ;;  %541 = vmatpush.bf16.msrb.mxu0 %v1161_v56 }
  0x15   : > { %v322_v24 = vrot.slane %v320_v21, 2  ;;  %v328_v25 = vrot.slane %v326_v23, 2  ;;  %v332_v26 = vsel %vm319_vm2, %v305_v12, %v313_v16  ;;  %v331_v29 = vsel %vm315_vm1, %v305_v12, %v313_v16  ;;  %v1081_v14 = vld [vmem:[%s1246_s7 + $0x28] sm:$0x7]  ;;  %v1163_v16 = vld [vmem:[%s1412_s1 + $0x58] sm:$0xff]  ;;  %v1162_v19 = vld [vmem:[%s1412_s1 + $0x50] sm:$0xff] }
  0x16   : > { %v334_v30 = vrot.slane %v332_v26, 2  ;;  %v338_v31 = vsel %vm319_vm2, %v306_v13, %v314_v18  ;;  %v348_v32 = vshrl.u32 %v318_v20, 16  ;;  %v351_v35 = vshll.u32 %v318_v20, 16  ;;  %v1082_v17 = vld [vmem:[%s1246_s7 + $0x2c] sm:$0x7]  ;;  %676 = vmatpush.bf16.msrb.mxu1 %v1163_v16  ;;  %s1151_s12 = sshll.u32 %s1425_s16, 3 }
  0x17   : > { %v361_v36 = vshrl.u32 %v325_v22, 16  ;;  %v337_v38 = vsel %vm315_vm1, %v306_v13, %v314_v18  ;;  %v340_v39 = vrot.slane %v338_v31, 2  ;;  %v364_v42 = vshll.u32 %v325_v22, 16  ;;  %v1165_v18 = vld [vmem:[%s1412_s1 + $0x68] sm:$0xff]  ;;  %v1083_v22 = vld [vmem:[%s1246_s7 + $0x30] sm:$0x7]  ;;  %s202_s17 = scalar_lea.vmem %s1415_s4, %s1151_s12 }
  0x18   : > { %v350_v41 = vrot.slane %v348_v32, 6  ;;  %v353_v43 = vrot.slane %v351_v35, 7  ;;  %v357_v44 = vshll.u32 %v322_v24, 16  ;;  %v374_v46 = vshrl.u32 %v331_v29, 16  ;;  %542 = vmatpush.bf16.msrb.mxu0 %v1160_v0  ;;  %728 = vmatpush.bf16.msrb.mxu2 %v1165_v18  ;;  %v1084_v23 = vld [vmem:[%s1246_s7 + $0x34] sm:$0x7] }
  0x19   : > { %v363_v45 = vrot.slane %v361_v36, 6  ;;  %v366_v47 = vrot.slane %v364_v42, 7  ;;  %v370_v48 = vshll.u32 %v328_v25, 16  ;;  %v377_v49 = vshll.u32 %v331_v29, 16  ;;  %v1047_v26 = vld [vmem:[%s1246_s7 + $0x28] sm:$0x3] }
  0x1a   : > { %v233_v37 = vld.sshfl [vmem:[#allocation1] sm:$0xff pattern:$0x73625140]  ;;  %v383_v50 = vshll.u32 %v334_v30, 16  ;;  %v354_v52 = vor.u32 %v353_v43, %v350_v41  ;;  %v376_v53 = vrot.slane %v374_v46, 6  ;;  %v387_v54 = vshrl.u32 %v337_v38, 16  ;;  %677 = vmatpush.bf16.msrb.mxu1 %v1162_v19 }
  0x1b   : > { %1024 = vmatmul.msk.bf16.vlgmr.msra.gmra.mxu0 %vm246_vm0, %v233_v37  ;;  %264 = vst [vmem:[#allocation1] ss:$4 sm:$0xff] %v204_v27  ;;  %v390_v55 = vshll.u32 %v337_v38, 16  ;;  %v367_v57 = vor.u32 %v366_v47, %v363_v45  ;;  %v379_v58 = vrot.slane %v377_v49, 7  ;;  %v396_v59 = vshll.u32 %v340_v39, 16  ;;  %v1167_v41 = vld [vmem:[%s1412_s1 + $0x78] sm:$0xff] }
  0x1c   : > { %267 = vst [vmem:[#allocation1 + $0x1] ss:$4 sm:$0xff] %v205_v28  ;;  %v355_v60 = vrot.slane %v354_v52, 2  ;;  %v359_v61 = vrot.slane %v357_v44, 7  ;;  %v389_v62 = vrot.slane %v387_v54, 6  ;;  %v372_v3 = vrot.slane %v370_v48, 7  ;;  %780 = vmatpush.bf16.msrb.mxu3 %v1167_v41 }
  0x1d   : > { %270 = vst [vmem:[#allocation1 + $0x2] ss:$4 sm:$0xff] %v206_v33  ;;  %v392_v63 = vrot.slane %v390_v55, 7  ;;  %v368_v2 = vrot.slane %v367_v57, 2  ;;  %v380_v4 = vor.u32 %v379_v58, %v376_v53  ;;  %v385_v5 = vrot.slane %v383_v50, 7  ;;  %v1164_v42 = vld [vmem:[%s1412_s1 + $0x60] sm:$0xff] }
  0x1e   : > { %273 = vst [vmem:[#allocation1 + $0x3] ss:$4 sm:$0xff] %v207_v34  ;;  %v398_v8 = vrot.slane %v396_v59, 7  ;;  %v360_v9 = vsel %vm1297_vm9, %v355_v60, %v359_v61  ;;  %v559_v20 = vrot.slane %v1081_v14, 2  ;;  %v560_v21 = vrot.slane %v1082_v17, 2  ;;  %729 = vmatpush.bf16.msrb.mxu2 %v1164_v42  ;;  %v1169_v16 = vld [vmem:[%s1412_s1 + $0x88] sm:$0xff] }
  0x1f   : > { %v393_v6 = vor.u32 %v392_v63, %v389_v62  ;;  %v381_v7 = vrot.slane %v380_v4, 2  ;;  %v373_v11 = vsel %vm1297_vm9, %v368_v2, %v372_v3  ;;  %v561_v27 = vrot.slane %v1083_v22, 2  ;;  %v1048_v29 = vld [vmem:[%s1246_s7 + $0x2c] sm:$0x3]  ;;  %v1049_v30 = vld [vmem:[%s1246_s7 + $0x30] sm:$0x3]  ;;  %915 = vmatpush.bf16.msra.mxu0 %v1169_v16 }
  0x20   : > { %v565_v24 = vsel %vm315_vm1, %v1081_v14, %v559_v20  ;;  %v571_v25 = vsel %vm315_vm1, %v1082_v17, %v560_v21  ;;  %v562_v28 = vrot.slane %v1084_v23, 2  ;;  %v566_v31 = vsel %vm319_vm2, %v1081_v14, %v559_v20  ;;  %v1050_v38 = vld [vmem:[%s1246_s7 + $0x34] sm:$0x3]  ;;  %v1064_v61 = vld [vmem:[%s1246_s7 + $0x3c] sm:$0x3] }
  0x21   : > { %v394_v10 = vrot.slane %v393_v6, 2  ;;  %v386_v13 = vsel %vm1297_vm9, %v381_v7, %v385_v5  ;;  %v587_v32 = vshrl.u32 %v565_v24, 16  ;;  %v572_v34 = vsel %vm319_vm2, %v1082_v17, %v560_v21  ;;  %v1065_v3 = vld [vmem:[%s1246_s7 + $0x40] sm:$0x3]  ;;  %v1066_v4 = vld [vmem:[%s1246_s7 + $0x44] sm:$0x3] }
  0x22   : > { %v590_v35 = vshll.u32 %v565_v24, 16  ;;  %v600_v36 = vshrl.u32 %v571_v25, 16  ;;  %v603_v37 = vshll.u32 %v571_v25, 16  ;;  %v577_v39 = vsel %vm315_vm1, %v1083_v22, %v561_v27  ;;  %v1132_v17 = vld [vmem:[%s1246_s7 + $0x4] sm:$0x7] }
  0x23   : > { %v399_v15 = vsel %vm1297_vm9, %v394_v10, %v398_v8  ;;  %v583_v40 = vsel %vm315_vm1, %v1084_v23, %v562_v28  ;;  %v568_v43 = vrot.slane %v566_v31, 2  ;;  %v574_v44 = vrot.slane %v572_v34, 2  ;;  %v1067_v8 = vld [vmem:[%s1246_s7 + $0x48] sm:$0x3]  ;;  %v1134_v21 = vld [vmem:[%s1246_s7 + $0xc] sm:$0x7] }
  0x24   : > { %v578_v45 = vsel %vm319_vm2, %v1083_v22, %v561_v27  ;;  %v584_v46 = vsel %vm319_vm2, %v1084_v23, %v562_v28  ;;  %v589_v47 = vrot.slane %v587_v32, 6  ;;  %v592_v48 = vrot.slane %v590_v35, 7  ;;  %v1133_v20 = vld [vmem:[%s1246_s7 + $0x8] sm:$0x7]  ;;  %v1135_v22 = vld [vmem:[%s1246_s7 + $0x10] sm:$0x7] }
  0x25   : > { %v274_v12 = vld.sshfl [vmem:[#allocation1] sm:$0xff pattern:$0x73625140]  ;;  %v602_v49 = vrot.slane %v600_v36, 6  ;;  %v605_v50 = vrot.slane %v603_v37, 7  ;;  %v613_v51 = vshrl.u32 %v577_v39, 16 }
  0x26   : > { %406 = vst [vmem:[#allocation1] ss:$4 sm:$0xff] %v360_v9  ;;  %1033 = vmatmul.msk.bf16.vlgmr.msra.gmra.mxu1 %vm246_vm0, %v274_v12  ;;  %v616_v52 = vshll.u32 %v577_v39, 16  ;;  %v626_v53 = vshrl.u32 %v583_v40, 16  ;;  %v629_v54 = vshll.u32 %v583_v40, 16  ;;  %v580_v55 = vrot.slane %v578_v45, 2 }
  0x27   : > { %409 = vst [vmem:[#allocation1 + $0x1] ss:$4 sm:$0xff] %v373_v11  ;;  %v586_v56 = vrot.slane %v584_v46, 2  ;;  %v593_v57 = vor.u32 %v592_v48, %v589_v47  ;;  %v596_v58 = vshll.u32 %v568_v43, 16  ;;  %v606_v59 = vor.u32 %v605_v50, %v602_v49 }
  0x28   : > { %412 = vst [vmem:[#allocation1 + $0x2] ss:$4 sm:$0xff] %v386_v13  ;;  %v609_v60 = vshll.u32 %v574_v44, 16  ;;  %v615_v62 = vrot.slane %v613_v51, 6  ;;  %v618_v63 = vrot.slane %v616_v52, 7  ;;  %v628_v0 = vrot.slane %v626_v53, 6 }
  0x29   : > { %415 = vst [vmem:[#allocation1 + $0x3] ss:$4 sm:$0xff] %v399_v15  ;;  %v631_v2 = vrot.slane %v629_v54, 7  ;;  %v622_v5 = vshll.u32 %v580_v55, 16  ;;  %v635_v6 = vshll.u32 %v586_v56, 16  ;;  %v594_v9 = vrot.slane %v593_v57, 2 }
  0x2a   : > { %v598_v10 = vrot.slane %v596_v58, 7  ;;  %v607_v11 = vrot.slane %v606_v59, 2  ;;  %v611_v12 = vrot.slane %v609_v60, 7  ;;  %v619_v13 = vor.u32 %v618_v63, %v615_v62  ;;  %v1166_v15 = vld [vmem:[%s1412_s1 + $0x70] sm:$0xff] }
  0x2b   : > { %v632_v14 = vor.u32 %v631_v2, %v628_v0  ;;  %v624_v18 = vrot.slane %v622_v5, 7  ;;  %v637_v19 = vrot.slane %v635_v6, 7  ;;  %781 = vmatpush.bf16.msrb.mxu3 %v1166_v15  ;;  %v798_v23 = vrot.slane %v1132_v17, 2 }
  0x2c   : > { %v799_v24 = vrot.slane %v1133_v20, 2  ;;  %v800_v25 = vrot.slane %v1134_v21, 2  ;;  %v599_v27 = vsel %vm1297_vm9, %v594_v9, %v598_v10  ;;  %v612_v28 = vsel %vm1297_vm9, %v607_v11, %v611_v12 }
  0x2d   : > { %v804_v31 = vsel %vm315_vm1, %v1132_v17, %v798_v23  ;;  %v805_v32 = vsel %vm319_vm2, %v1132_v17, %v798_v23  ;;  %v1098_v17 = vld [vmem:[%s1246_s7 + $0x4] sm:$0x3]  ;;  %vm941_vm10 = vcmask 257024  }
  0x2e   : > { %v811_v34 = vsel %vm319_vm2, %v1133_v20, %v799_v24  ;;  %v807_v35 = vrot.slane %v805_v32, 2  ;;  %v816_v37 = vsel %vm315_vm1, %v1134_v21, %v800_v25  ;;  %v826_v42 = vshrl.u32 %v804_v31, 16 }
  0x2f   : > { %v813_v36 = vrot.slane %v811_v34, 2  ;;  %v829_v44 = vshll.u32 %v804_v31, 16  ;;  %v852_v55 = vshrl.u32 %v816_v37, 16  ;;  %v855_v58 = vshll.u32 %v816_v37, 16 }
  0x30   : > { %v416_v33 = vld.sshfl [vmem:[#allocation1] sm:$0xff pattern:$0x73625140]  ;;  %v835_v45 = vshll.u32 %v807_v35, 16  ;;  %v828_v49 = vrot.slane %v826_v42, 6 }
  0x31   : > { %1046 = vmatmul.msk.bf16.vlgmr.msra.gmra.mxu2 %vm246_vm0, %v416_v33  ;;  %458 = vst [vmem:[#allocation1] ss:$4 sm:$0xff] %v1047_v26  ;;  %v801_v26 = vrot.slane %v1135_v22, 2  ;;  %v810_v33 = vsel %vm315_vm1, %v1133_v20, %v799_v24  ;;  %v848_v51 = vshll.u32 %v813_v36, 16  ;;  %v831_v53 = vrot.slane %v829_v44, 7 }
  0x32   : > { %461 = vst [vmem:[#allocation1 + $0x1] ss:$4 sm:$0xff] %v1048_v29  ;;  %v620_v29 = vrot.slane %v619_v13, 2  ;;  %v839_v46 = vshrl.u32 %v810_v33, 16  ;;  %v842_v50 = vshll.u32 %v810_v33, 16  ;;  %v837_v56 = vrot.slane %v835_v45, 7 }
  0x33   : > { %464 = vst [vmem:[#allocation1 + $0x2] ss:$4 sm:$0xff] %v1049_v30  ;;  %v633_v30 = vrot.slane %v632_v14, 2  ;;  %v822_v40 = vsel %vm315_vm1, %v1135_v22, %v801_v26  ;;  %v823_v41 = vsel %vm319_vm2, %v1135_v22, %v801_v26  ;;  %v832_v60 = vor.u32 %v831_v53, %v828_v49  ;;  %v1100_v22 = vld [vmem:[%s1246_s7 + $0xc] sm:$0x3] }
  0x34   : > { %467 = vst [vmem:[#allocation1 + $0x3] ss:$4 sm:$0xff] %v1050_v38  ;;  %v817_v38 = vsel %vm319_vm2, %v1134_v21, %v800_v25  ;;  %v825_v43 = vrot.slane %v823_v41, 2  ;;  %v625_v48 = vsel %vm1297_vm9, %v620_v29, %v624_v18  ;;  %v841_v54 = vrot.slane %v839_v46, 6  ;;  %v1101_v24 = vld [vmem:[%s1246_s7 + $0x10] sm:$0x3] }
  0x35   : > { %v819_v39 = vrot.slane %v817_v38, 2  ;;  %v638_v52 = vsel %vm1297_vm9, %v633_v30, %v637_v19  ;;  %v844_v57 = vrot.slane %v842_v50, 7  ;;  %v865_v62 = vshrl.u32 %v822_v40, 16  ;;  %v1099_v19 = vld [vmem:[%s1246_s7 + $0x8] sm:$0x3] }
  0x36   : > { %v868_v63 = vshll.u32 %v822_v40, 16  ;;  %v850_v2 = vrot.slane %v848_v51, 7  ;;  %v833_v5 = vrot.slane %v832_v60, 2  ;;  %v1115_v25 = vld [vmem:[%s1246_s7 + $0x18] sm:$0x3] }
  0x37   : > { %v861_v59 = vshll.u32 %v819_v39, 16  ;;  %v845_v0 = vor.u32 %v844_v57, %v841_v54  ;;  %v867_v6 = vrot.slane %v865_v62, 6  ;;  %v1116_v26 = vld [vmem:[%s1246_s7 + $0x1c] sm:$0x3]  ;;  %v1118_v29 = vld [vmem:[%s1246_s7 + $0x24] sm:$0x3] }
  0x38   : > { %v838_v12 = vsel %vm1297_vm9, %v833_v5, %v837_v56  ;;  %v1179_v56 = vld [vmem:[%s1413_s2] ss:$0 sm:$0xff] }
  0x39   : > { %v846_v9 = vrot.slane %v845_v0, 2  ;;  %v863_v11 = vrot.slane %v861_v59, 7 }
  0x3b   : > { %v468_v7 = vld.sshfl [vmem:[#allocation1] sm:$0xff pattern:$0x73625140]  ;;  %v851_v15 = vsel %vm1297_vm9, %v846_v9, %v850_v2 }
  0x3c   : > { %1063 = vmatmul.msk.bf16.vlgmr.msra.gmra.mxu3 %vm246_vm0, %v468_v7  ;;  %510 = vst [vmem:[#allocation1] ss:$4 sm:$0xff] %v1064_v61  ;;  %v854_v61 = vrot.slane %v852_v55, 6  ;;  %v870_v7 = vrot.slane %v868_v63, 7 }
  0x3d   : > { %513 = vst [vmem:[#allocation1 + $0x1] ss:$4 sm:$0xff] %v1065_v3  ;;  %v857_v3 = vrot.slane %v855_v58, 7 }
  0x3e   : > { %516 = vst [vmem:[#allocation1 + $0x2] ss:$4 sm:$0xff] %v1066_v4  ;;  %v874_v4 = vshll.u32 %v825_v43, 16  ;;  %v871_v13 = vor.u32 %v870_v7, %v867_v6 }
  0x3f   : > { %519 = vst [vmem:[#allocation1 + $0x3] ss:$4 sm:$0xff] %v1067_v8  ;;  %v1168_v8 = vld [vmem:[%s1412_s1 + $0x80] sm:$0xff]  ;;  %v858_v10 = vor.u32 %v857_v3, %v854_v61 }
  0x40   : > { %v876_v14 = vrot.slane %v874_v4, 7  ;;  %916 = vmatpush.bf16.msra.mxu0 %v1168_v8  ;;  %v872_v18 = vrot.slane %v871_v13, 2  ;;  %v1180_v61 = vld [vmem:[%s1414_s3] ss:$0 sm:$0xff] }
  0x41   : > { %v859_v16 = vrot.slane %v858_v10, 2 }
  0x42   : > { %v877_v23 = vsel %vm1297_vm9, %v872_v18, %v876_v14 }
  0x43   : > { %v864_v20 = vsel %vm1297_vm9, %v859_v16, %v863_v11 }
  0x46   : > { %v520_v47 = vld.sshfl [vmem:[#allocation1] sm:$0xff pattern:$0x73625140] }
  0x47   : > { %1080 = vmatmul.msk.bf16.vlgmr.msrb.gmra.mxu0 %vm246_vm0, %v520_v47  ;;  %645 = vst [vmem:[#allocation1] ss:$4 sm:$0xff] %v599_v27 }
  0x48   : > { %648 = vst [vmem:[#allocation1 + $0x1] ss:$4 sm:$0xff] %v612_v28  ;;  %v1117_v28 = vld [vmem:[%s1246_s7 + $0x20] sm:$0x3] }
  0x49   : > { %651 = vst [vmem:[#allocation1 + $0x2] ss:$4 sm:$0xff] %v625_v48 }
  0x4a   : > { %654 = vst [vmem:[#allocation1 + $0x3] ss:$4 sm:$0xff] %v638_v52 }
  0x51   : > { %v655_v21 = vld.sshfl [vmem:[#allocation1] sm:$0xff pattern:$0x73625140] }
  0x52   : > { %1097 = vmatmul.msk.bf16.vlgmr.msrb.gmra.mxu1 %vm246_vm0, %v655_v21  ;;  %697 = vst [vmem:[#allocation1] ss:$4 sm:$0xff] %v1098_v17 }
  0x53   : > { %700 = vst [vmem:[#allocation1 + $0x1] ss:$4 sm:$0xff] %v1099_v19 }
  0x54   : > { %703 = vst [vmem:[#allocation1 + $0x2] ss:$4 sm:$0xff] %v1100_v22 }
  0x55   : > { %706 = vst [vmem:[#allocation1 + $0x3] ss:$4 sm:$0xff] %v1101_v24 }
  0x5c   : > { %v707_v27 = vld.sshfl [vmem:[#allocation1] sm:$0xff pattern:$0x73625140] }
  0x5d   : > { %1114 = vmatmul.msk.bf16.vlgmr.msrb.gmra.mxu2 %vm246_vm0, %v707_v27  ;;  %749 = vst [vmem:[#allocation1] ss:$4 sm:$0xff] %v1115_v25 }
  0x5e   : > { %752 = vst [vmem:[#allocation1 + $0x1] ss:$4 sm:$0xff] %v1116_v26 }
  0x5f   : > { %755 = vst [vmem:[#allocation1 + $0x2] ss:$4 sm:$0xff] %v1117_v28 }
  0x60   : > { %758 = vst [vmem:[#allocation1 + $0x3] ss:$4 sm:$0xff] %v1118_v29 }
  0x67   : > { %v759_v1 = vld.sshfl [vmem:[#allocation1] sm:$0xff pattern:$0x73625140] }
  0x68   : > { %1131 = vmatmul.msk.bf16.vlgmr.msrb.gmra.mxu3 %vm246_vm0, %v759_v1  ;;  %884 = vst [vmem:[#allocation1] ss:$4 sm:$0xff] %v838_v12 }
  0x69   : > { %887 = vst [vmem:[#allocation1 + $0x1] ss:$4 sm:$0xff] %v851_v15 }
  0x6a   : > { %890 = vst [vmem:[#allocation1 + $0x2] ss:$4 sm:$0xff] %v864_v20 }
  0x6b   : > { %893 = vst [vmem:[#allocation1 + $0x3] ss:$4 sm:$0xff] %v877_v23 }
  0x72   : > { %v894_v30 = vld.sshfl [vmem:[#allocation1] sm:$0xff pattern:$0x73625140] }
  0x73   : > { %1148 = vmatmul.msk.bf16.vlgmr.msra.gmra.mxu0 %vm246_vm0, %v894_v30 }
  0x98   : > { %v258_v31 = vpop.f32.mrf.mxu0 }
  0xa0   : > { %v260_v33 = vpop.f32.mrf.mxu0 }
  0xa3   : > { %v298_v32 = vpop.f32.mrf.mxu1 }
  0xa4   : > { %v299_v35 = vadd.f32 %v298_v32, %v258_v31 }
  0xab   : > { %v300_v37 = vpop.f32.mrf.mxu1 }
  0xac   : > { %v301_v44 = vadd.f32 %v300_v37, %v260_v33 }
  0xb4   : > { %v440_v34 = vpop.f32.mrf.mxu2 }
  0xb5   : > { %v445_v38 = vadd.f32 %v440_v34, %v299_v35 }
  0xbc   : > { %v442_v40 = vpop.f32.mrf.mxu2 }
  0xbd   : > { %v446_v48 = vadd.f32 %v442_v40, %v301_v44 }
  0xbf   : > { %v492_v36 = vpop.f32.mrf.mxu3 }
  0xc0   : > { %v497_v41 = vadd.f32 %v492_v36, %v445_v38 }
  0xc4   : > { %v544_v39 = vpop.f32.mrf.mxu0 }
  0xc5   : > { %v549_v45 = vadd.f32 %v544_v39, %v497_v41 }
  0xc7   : > { %v494_v42 = vpop.f32.mrf.mxu3 }
  0xc8   : > { %v498_v50 = vadd.f32 %v494_v42, %v446_v48 }
  0xcc   : > { %v546_v47 = vpop.f32.mrf.mxu0 }
  0xcd   : > { %v550_v55 = vadd.f32 %v546_v47, %v498_v50 }
  0xcf   : > { %v679_v43 = vpop.f32.mrf.mxu1 }
  0xd0   : > { %v684_v49 = vadd.f32 %v679_v43, %v549_v45 }
  0xd7   : > { %v681_v54 = vpop.f32.mrf.mxu1 }
  0xd8   : > { %v685_v59 = vadd.f32 %v681_v54, %v550_v55 }
  0xe0   : > { %v731_v46 = vpop.f32.mrf.mxu2 }
  0xe1   : > { %v736_v51 = vadd.f32 %v731_v46, %v684_v49 }
  0xe8   : > { %v733_v57 = vpop.f32.mrf.mxu2 }
  0xe9   : > { %v737_v62 = vadd.f32 %v733_v57, %v685_v59 }
  0xeb   : > { %v783_v52 = vpop.f32.mrf.mxu3 }
  0xec   : > { %v788_v53 = vadd.f32 %v783_v52, %v736_v51 }
  0xf0   : > { %v918_v58 = vpop.f32.mrf.mxu0 }
  0xf1   : > { %v923_v60 = vadd.f32 %v918_v58, %v788_v53 }
  0xf3   : > { %v929_v63 = vmul.f32 %v1179_v56, %v923_v60  ;;  %v785_v0 = vpop.f32.mrf.mxu3 }
  0xf4   : > { %v789_v3 = vadd.f32 %v785_v0, %v737_v62 }
  0xf5   : > { %v935_v2 = vadd.f32 %v1180_v61, %v929_v63 }
  0xf7   : > { %v937_v4 = vmax.f32 %v935_v2, 0.0 }
  0xf8   : > { %v920_v5 = vpop.f32.mrf.mxu0 }
  0xf9   : > { %v939_v6 = vpack.c.bf16 %v937_v4, %v937_v4  ;;  %v924_v7 = vadd.f32 %v920_v5, %v789_v3 }
  0xfb   : > { %942 = vst.msk [vmem:[%s202_s17] sm:$0xf] %vm941_vm10, %v939_v6  ;;  %v930_v8 = vmul.f32 %v1179_v56, %v924_v7 }
  0xfd   : > { %v936_v9 = vadd.f32 %v1180_v61, %v930_v8 }
  0xff   : > { %v938_v10 = vmax.f32 %v936_v9, 0.0 }
 0x101   : > { %v940_v11 = vpack.c.bf16 %v938_v10, %v938_v10 }
 0x103   : > { %943 = vst.msk [vmem:[%s202_s17 + $0x4] sm:$0xf] %vm941_vm10, %v940_v11 }
 0x104 PF: > { %s14_s15 = sadd.s32 1, %s1187_s15  }
 0x105   : > { %p11_p5 = scmp.ge.s32.totalorder %s14_s15, 4  }
 0x107   :  { %13 = sbr.rel (!%p11_p5) target bundleno = 1 (0x1), region = 106 }

</bundles_post_ra>
